<compile_context>
chip_gen: v5e
topology: v5e:2x2
jax: 0.10.0
libtpu: 0.0.40
codegen_flags: <defaults>
</compile_context>

<pallas_src>
import math
import random

import jax
import jax.numpy as jnp
from jax.experimental import pallas as pl
from jax.experimental.pallas import tpu as pltpu


# ----------------------------------------------------------------------------
# Fused Pallas kernel: whole forward pass, everything resident in VMEM.
# ----------------------------------------------------------------------------
def nlc_vae_fused_kernel(
    # scalar branch flag (SMEM, int32 {0,1})
    flag_ref,
    # data
    x_ref, yhat_ref, y_ref, eps1_ref, eps2_ref,
    # weights (MXU operands in bf16, biases in f32)
    w1x_ref,                       # [D_X, 2H] bf16 : ey_w1x || dy_w1x
    ey_w1y_ref, ey_b1_ref, ey_wmulv_ref, ey_bmulv_ref,
    ez_w1_ref, ez_b1_ref, ez_wmulv_ref, ez_bmulv_ref,
    wz_ref,                        # [Z, 2H]   bf16 : dz_w1 || dy_w1z
    dz_b1_ref, dz_w2_ref, dz_b2_ref,
    dy_b1_ref, dy_w2_ref, dy_b2_ref,
    # outputs
    slab_ref,                      # [bp, slab_w] f32 lane-dense packed outputs
    zdec_ref,                      # [bp, D_X]    f32
    # scratch
    mulv_z_sc,                     # [bp, 2Z]     f32
):
    bp = x_ref.shape[0]
    hidden = ey_b1_ref.shape[1]
    z_dim = eps1_ref.shape[1]
    k_cls = dy_b2_ref.shape[1]
    f32 = jnp.float32
    bf16 = jnp.bfloat16

    # --- ONE pass over the dominant K=D_X contraction (encoder_y + decoder_y)
    x = x_ref[...].astype(bf16)
    xh = jnp.dot(x, w1x_ref[...], preferred_element_type=f32)        # [bp, 2H]
    xh_ey = xh[:, :hidden]
    xh_dy = xh[:, hidden:]

    ey_b1 = jnp.broadcast_to(ey_b1_ref[...], (bp, hidden))           # hoisted

    # --- encoder_y(x, y_hat) -> (mu || logvar); reparameterize -> z_hat ------
    h_hat = jnp.maximum(
        xh_ey
        + jnp.dot(yhat_ref[...].astype(bf16), ey_w1y_ref[...],
                  preferred_element_type=f32)
        + ey_b1, 0.0)
    mulv_hat = (jnp.dot(h_hat.astype(bf16), ey_wmulv_ref[...],
                        preferred_element_type=f32) + ey_bmulv_ref[...])
    z_hat = (eps1_ref[...] * jnp.exp(mulv_hat[:, z_dim:] * 0.5)
             + mulv_hat[:, :z_dim])                                   # [bp, Z]

    # --- z-posterior: exactly ONE of the two branches runs at runtime --------
    take_y = flag_ref[0] == 1

    @pl.when(take_y)
    def _branch_a():               # encoder_y(x, y), reuses xh_ey / ey_b1
        h_y = jnp.maximum(
            xh_ey
            + jnp.dot(y_ref[...].astype(bf16), ey_w1y_ref[...],
                      preferred_element_type=f32)
            + ey_b1, 0.0)
        mulv_z_sc[...] = (jnp.dot(h_y.astype(bf16), ey_wmulv_ref[...],
                                  preferred_element_type=f32)
                          + ey_bmulv_ref[...])

    @pl.when(jnp.logical_not(take_y))
    def _branch_b():               # encoder_z(z_hat)
        h_z = jnp.maximum(
            jnp.dot(z_hat.astype(bf16), ez_w1_ref[...],
                    preferred_element_type=f32) + ez_b1_ref[...], 0.0)
        mulv_z_sc[...] = (jnp.dot(h_z.astype(bf16), ez_wmulv_ref[...],
                                  preferred_element_type=f32)
                          + ez_bmulv_ref[...])

    mulv_z = mulv_z_sc[...]
    z = (eps2_ref[...] * jnp.exp(mulv_z[:, z_dim:] * 0.5)
         + mulv_z[:, :z_dim])                                         # [bp, Z]

    # --- decoder_z(z), decoder_y(x, z), decoder_y(x, z_hat):
    #     their first layers share ONE matmul  [z ; z_hat] @ [dz_w1 || dy_w1z]
    zz = jnp.concatenate([z, z_hat], axis=0).astype(bf16)             # [2bp, Z]
    prod = jnp.dot(zz, wz_ref[...], preferred_element_type=f32)       # [2bp, 2H]

    h_dz = jnp.maximum(prod[:bp, :hidden] + dz_b1_ref[...], 0.0)
    zdec_ref[...] = (jnp.dot(h_dz.astype(bf16), dz_w2_ref[...],
                             preferred_element_type=f32) + dz_b2_ref[...])

    xh_dy2 = jnp.concatenate([xh_dy, xh_dy], axis=0)                  # [2bp, H]
    h_dy = jnp.maximum(prod[:, hidden:] + xh_dy2 + dy_b1_ref[...], 0.0)
    y_pair = (jnp.dot(h_dy.astype(bf16), dy_w2_ref[...],
                      preferred_element_type=f32) + dy_b2_ref[...])   # [2bp, K]

    # --- pack the lane-sparse outputs into one lane-dense slab ---------------
    o = 0
    slab_ref[:, o:o + 2 * z_dim] = mulv_hat
    o += 2 * z_dim
    slab_ref[:, o:o + 2 * z_dim] = mulv_z
    o += 2 * z_dim
    slab_ref[:, o:o + z_dim] = z_hat
    o += z_dim
    slab_ref[:, o:o + z_dim] = z
    o += z_dim
    slab_ref[:, o:o + k_cls] = y_pair[:bp]
    o += k_cls
    slab_ref[:, o:o + k_cls] = y_pair[bp:]
    o += k_cls
    pad = slab_ref.shape[1] - o
    if pad > 0:
        slab_ref[:, o:] = jnp.zeros((bp, pad), f32)


# ----------------------------------------------------------------------------
# Wrapper: one pallas_call, batch padded to a full bf16 sublane tile (16).
# ----------------------------------------------------------------------------
_VMEM = pl.BlockSpec(memory_space=pltpu.MemorySpace.VMEM)
_SMEM = pl.BlockSpec(memory_space=pltpu.MemorySpace.SMEM)
_BATCH_TILE = 16        # bf16 activations -> pad batch to a (16, 128) tile


def _round_up(n, m):
    return ((n + m - 1) // m) * m


def _pad_rows(a, rows):
    pad = rows - a.shape[0]
    return a if pad == 0 else jnp.pad(a, ((0, pad), (0, 0)))


@jax.jit
def _fused_forward(params, x, y_hat, y_arr, flag, rng_key):
    B = x.shape[0]
    x_flat = x.reshape(B, -1)                 # == torch x.view(B, -1) (NCHW)
    d_x = x_flat.shape[1]
    z_dim = params["ey_wmulv"].shape[1] // 2
    k_cls = y_hat.shape[1]

    bp = max(_BATCH_TILE, _round_up(B, _BATCH_TILE))
    xp = _pad_rows(x_flat, bp)
    yhp = _pad_rows(y_hat, bp)
    yp = _pad_rows(y_arr, bp)

    # TODO(synk): eps could be generated in-kernel via pltpu.prng_seed /
    # pltpu.stateful_normal to drop these two surrounding XLA ops, at the cost
    # of a different RNG stream than torch.randn_like / jax.random.
    k1, k2 = jax.random.split(rng_key)
    eps1 = jax.random.normal(k1, (bp, z_dim), jnp.float32)
    eps2 = jax.random.normal(k2, (bp, z_dim), jnp.float32)

    used = 6 * z_dim + 2 * k_cls
    slab_w = _round_up(used, 128)

    out_shapes = (
        jax.ShapeDtypeStruct((bp, slab_w), jnp.float32),   # packed small outs
        jax.ShapeDtypeStruct((bp, d_x), jnp.float32),      # z_dec_mu
    )

    # TODO(synk): single grid point -> on v7x only one TensorCore is used; for
    # larger batches add a leading batch-tile grid axis with
    # dimension_semantics=("parallel",) to shard across both TCs.
    slab, z_dec_mu = pl.pallas_call(
        nlc_vae_fused_kernel,
        out_shape=out_shapes,
        in_specs=[_SMEM] + [_VMEM] * 21,
        out_specs=(_VMEM, _VMEM),
        scratch_shapes=[pltpu.VMEM((bp, 2 * z_dim), jnp.float32)],
    )(
        flag,
        xp, yhp, yp, eps1, eps2,
        params["w1x"],
        params["ey_w1y"], params["ey_b1"], params["ey_wmulv"], params["ey_bmulv"],
        params["ez_w1"], params["ez_b1"], params["ez_wmulv"], params["ez_bmulv"],
        params["wz"],
        params["dz_b1"], params["dz_w2"], params["dz_b2"],
        params["dy_b1"], params["dy_w2"], params["dy_b2"],
    )

    o = 0
    mulv_hat = slab[:B, o:o + 2 * z_dim]; o += 2 * z_dim
    mulv_z = slab[:B, o:o + 2 * z_dim]; o += 2 * z_dim
    z_hat = slab[:B, o:o + z_dim]; o += z_dim
    z = slab[:B, o:o + z_dim]; o += z_dim
    recon_y = slab[:B, o:o + k_cls]; o += k_cls
    recon_y_hat = slab[:B, o:o + k_cls]

    return {
        "y": recon_y,
        "y_hat": recon_y_hat,
        "z_dec_mu": z_dec_mu[:B],
        "z": z,
        "z_hat": z_hat,
        "z_enc_doc": {"mu": mulv_z[:, :z_dim], "logvar": mulv_z[:, z_dim:]},
        "z_hat_enc_doc": {"mu": mulv_hat[:, :z_dim],
                          "logvar": mulv_hat[:, z_dim:]},
    }


def nlc_vae_forward(params, x, y_hat, y=None, *, rng_key, coin=None):
    """Mirrors NoisyLabelCorrectionVAE.forward.

    The Python-level `random.random() < 0.5` coin of the torch module is kept
    host-side (optionally overridden via `coin`) and handed to the single
    fused kernel as a {0,1} int32 SMEM scalar; pl.when skips the unused
    branch at runtime, so one compiled kernel serves both branches.
    """
    take_y_branch = (y is not None) and (coin if coin is not None
                                         else (random.random() < 0.5))
    y_arr = y if y is not None else jnp.zeros_like(y_hat)
    flag = jnp.asarray([1 if take_y_branch else 0], dtype=jnp.int32)
    return _fused_forward(params, x, y_hat, y_arr, flag, rng_key)


# ----------------------------------------------------------------------------
# Parameter construction (torch.nn.Linear-style init), pre-split / pre-fused
# to match the kernel layout; matmul weights stored in bf16.
# ----------------------------------------------------------------------------
def _uniform(key, shape, bound):
    return jax.random.uniform(key, shape, jnp.float32, -bound, bound)


def init_params(key, d_x, num_classes, hidden, z_dim):
    ks = jax.random.split(key, 16)
    b_xy = 1.0 / math.sqrt(d_x + num_classes)
    b_h = 1.0 / math.sqrt(hidden)
    b_z = 1.0 / math.sqrt(z_dim)
    b_xz = 1.0 / math.sqrt(d_x + z_dim)
    bf16 = jnp.bfloat16

    ey_w1 = _uniform(ks[0], (d_x + num_classes, hidden), b_xy)
    ey_b1 = _uniform(ks[1], (1, hidden), b_xy)
    ey_wmulv = _uniform(ks[2], (hidden, 2 * z_dim), b_h)
    ey_bmulv = _uniform(ks[3], (1, 2 * z_dim), b_h)
    ez_w1 = _uniform(ks[4], (z_dim, hidden), b_z)
    ez_b1 = _uniform(ks[5], (1, hidden), b_z)
    ez_wmulv = _uniform(ks[6], (hidden, 2 * z_dim), b_h)
    ez_bmulv = _uniform(ks[7], (1, 2 * z_dim), b_h)
    dz_w1 = _uniform(ks[8], (z_dim, hidden), b_z)
    dz_b1 = _uniform(ks[9], (1, hidden), b_z)
    dz_w2 = _uniform(ks[10], (hidden, d_x), b_h)
    dz_b2 = _uniform(ks[11], (1, d_x), b_h)
    dy_w1 = _uniform(ks[12], (d_x + z_dim, hidden), b_xz)
    dy_b1 = _uniform(ks[13], (1, hidden), b_xz)
    dy_w2 = _uniform(ks[14], (hidden, num_classes), b_h)
    dy_b2 = _uniform(ks[15], (1, num_classes), b_h)

    return {
        # fused MXU weights (bf16); biases stay f32.
        "w1x": jnp.concatenate([ey_w1[:d_x], dy_w1[:d_x]], axis=1).astype(bf16),
        "ey_w1y": ey_w1[d_x:].astype(bf16),
        "ey_b1": ey_b1,
        "ey_wmulv": ey_wmulv.astype(bf16),
        "ey_bmulv": ey_bmulv,
        "ez_w1": ez_w1.astype(bf16),
        "ez_b1": ez_b1,
        "ez_wmulv": ez_wmulv.astype(bf16),
        "ez_bmulv": ez_bmulv,
        "wz": jnp.concatenate([dz_w1, dy_w1[d_x:]], axis=1).astype(bf16),
        "dz_b1": dz_b1,
        "dz_w2": dz_w2.astype(bf16),
        "dz_b2": dz_b2,
        "dy_b1": dy_b1,
        "dy_w2": dy_w2.astype(bf16),
        "dy_b2": dy_b2,
        # TODO(synk): pretrained_clf is held by the torch module but never used
        # in forward(); no parameters are created for it. `nu` is unused too.
        "nu": 2,
    }


# ----------------------------------------------------------------------------
# Pure-JAX reference (same bf16-operand / f32-accumulate math, same eps).
# ----------------------------------------------------------------------------
def _reference_forward(params, x, y_hat, y_arr, take_y, rng_key):
    bf16 = jnp.bfloat16

    def dot(a, b):
        return jnp.dot(a.astype(bf16), b, preferred_element_type=jnp.float32)

    B = x.shape[0]
    x_flat = x.reshape(B, -1)
    hidden = params["ey_b1"].shape[1]
    z_dim = params["ey_wmulv"].shape[1] // 2
    bp = max(_BATCH_TILE, _round_up(B, _BATCH_TILE))
    k1, k2 = jax.random.split(rng_key)
    eps1 = jax.random.normal(k1, (bp, z_dim), jnp.float32)[:B]
    eps2 = jax.random.normal(k2, (bp, z_dim), jnp.float32)[:B]

    xh = dot(x_flat, params["w1x"])
    xh_ey, xh_dy = xh[:, :hidden], xh[:, hidden:]

    h_hat = jnp.maximum(xh_ey + dot(y_hat, params["ey_w1y"]) + params["ey_b1"], 0.0)
    mulv_hat = dot(h_hat, params["ey_wmulv"]) + params["ey_bmulv"]
    mu_hat, lv_hat = mulv_hat[:, :z_dim], mulv_hat[:, z_dim:]
    z_hat = eps1 * jnp.exp(lv_hat * 0.5) + mu_hat

    if take_y:
        h = jnp.maximum(xh_ey + dot(y_arr, params["ey_w1y"]) + params["ey_b1"], 0.0)
        mulv = dot(h, params["ey_wmulv"]) + params["ey_bmulv"]
    else:
        h = jnp.maximum(dot(z_hat, params["ez_w1"]) + params["ez_b1"], 0.0)
        mulv = dot(h, params["ez_wmulv"]) + params["ez_bmulv"]
    mu_z, lv_z = mulv[:, :z_dim], mulv[:, z_dim:]
    z = eps2 * jnp.exp(lv_z * 0.5) + mu_z

    prod_z = dot(z, params["wz"])
    prod_zh = dot(z_hat, params["wz"])
    h_dz = jnp.maximum(prod_z[:, :hidden] + params["dz_b1"], 0.0)
    z_dec_mu = dot(h_dz, params["dz_w2"]) + params["dz_b2"]
    h_y = jnp.maximum(prod_z[:, hidden:] + xh_dy + params["dy_b1"], 0.0)
    h_yh = jnp.maximum(prod_zh[:, hidden:] + xh_dy + params["dy_b1"], 0.0)
    recon_y = dot(h_y, params["dy_w2"]) + params["dy_b2"]
    recon_y_hat = dot(h_yh, params["dy_w2"]) + params["dy_b2"]

    return {"y": recon_y, "y_hat": recon_y_hat, "z_dec_mu": z_dec_mu,
            "z": z, "z_hat": z_hat,
            "z_enc_doc": {"mu": mu_z, "logvar": lv_z},
            "z_hat_enc_doc": {"mu": mu_hat, "logvar": lv_hat}}


# ----------------------------------------------------------------------------
if __name__ == "__main__":
    random.seed(0)

    B, C, Himg, Wimg = 2, 4, 16, 16
    NUM_CLASSES = 8
    HIDDEN = 32
    Z_DIM = 16
    D_X = C * Himg * Wimg

    root = jax.random.PRNGKey(0)
    k_param, k_x, k_yh, k_y, k_fwd = jax.random.split(root, 5)

    params = init_params(k_param, D_X, NUM_CLASSES, HIDDEN, Z_DIM)

    x = jax.random.normal(k_x, (B, C, Himg, Wimg), jnp.float32)
    y_hat = jax.nn.one_hot(
        jax.random.randint(k_yh, (B,), 0, NUM_CLASSES), NUM_CLASSES,
        dtype=jnp.float32)
    y = jax.nn.one_hot(
        jax.random.randint(k_y, (B,), 0, NUM_CLASSES), NUM_CLASSES,
        dtype=jnp.float32)

    def check(res, ref):
        assert res["y"].shape == (B, NUM_CLASSES)
        assert res["y_hat"].shape == (B, NUM_CLASSES)
        assert res["z_dec_mu"].shape == (B, D_X)
        assert res["z"].shape == (B, Z_DIM)
        assert res["z_hat"].shape == (B, Z_DIM)
        assert res["z_enc_doc"]["mu"].shape == (B, Z_DIM)
        assert res["z_hat_enc_doc"]["logvar"].shape == (B, Z_DIM)
        flat_res = jax.tree_util.tree_leaves(res)
        assert all(bool(jnp.all(jnp.isfinite(v))) for v in flat_res)
        for a, b in zip(jax.tree_util.tree_leaves(res),
                        jax.tree_util.tree_leaves(ref)):
            assert bool(jnp.allclose(a, b, rtol=5e-3, atol=5e-3)), \
                "Pallas output diverges from pure-JAX reference"

    # Branch A: encoder_y(x, y)
    res_a = nlc_vae_forward(params, x, y_hat, y=y, rng_key=k_fwd, coin=True)
    res_a = jax.tree_util.tree_map(jax.block_until_ready, res_a)
    ref_a = _reference_forward(params, x, y_hat, y, True, k_fwd)
    check(res_a, ref_a)

    # Branch B: encoder_z(z_hat) (same compiled kernel, different flag)
    res_b = nlc_vae_forward(params, x, y_hat, y=y, rng_key=k_fwd, coin=False)
    res_b = jax.tree_util.tree_map(jax.block_until_ready, res_b)
    ref_b = _reference_forward(params, x, y_hat, y, False, k_fwd)
    check(res_b, ref_b)

    # y=None path (always branch B), shape/finiteness only.
    res_n = nlc_vae_forward(params, x, y_hat, y=None, rng_key=k_fwd)
    jax.tree_util.tree_map(jax.block_until_ready, res_n)

    print("KERNEL_OK")
</pallas_src>

<mosaic_0001>
module attributes {stable_mosaic.version = 11 : i64} {
  func.func @nlc_vae_fused_kernel(%arg0: memref<1xi32, #tpu.memory_space<smem>>, %arg1: memref<16x1024xf32, #tpu.memory_space<vmem>>, %arg2: memref<16x8xf32, #tpu.memory_space<vmem>>, %arg3: memref<16x8xf32, #tpu.memory_space<vmem>>, %arg4: memref<16x16xf32, #tpu.memory_space<vmem>>, %arg5: memref<16x16xf32, #tpu.memory_space<vmem>>, %arg6: memref<1024x64xbf16, #tpu.memory_space<vmem>>, %arg7: memref<8x32xbf16, #tpu.memory_space<vmem>>, %arg8: memref<1x32xf32, #tpu.memory_space<vmem>>, %arg9: memref<32x32xbf16, #tpu.memory_space<vmem>>, %arg10: memref<1x32xf32, #tpu.memory_space<vmem>>, %arg11: memref<16x32xbf16, #tpu.memory_space<vmem>>, %arg12: memref<1x32xf32, #tpu.memory_space<vmem>>, %arg13: memref<32x32xbf16, #tpu.memory_space<vmem>>, %arg14: memref<1x32xf32, #tpu.memory_space<vmem>>, %arg15: memref<16x64xbf16, #tpu.memory_space<vmem>>, %arg16: memref<1x32xf32, #tpu.memory_space<vmem>>, %arg17: memref<32x1024xbf16, #tpu.memory_space<vmem>>, %arg18: memref<1x1024xf32, #tpu.memory_space<vmem>>, %arg19: memref<1x32xf32, #tpu.memory_space<vmem>>, %arg20: memref<32x8xbf16, #tpu.memory_space<vmem>>, %arg21: memref<1x8xf32, #tpu.memory_space<vmem>>, %arg22: memref<16x128xf32, #tpu.memory_space<vmem>>, %arg23: memref<16x1024xf32, #tpu.memory_space<vmem>>, %arg24: memref<16x32xf32, #tpu.memory_space<vmem>>) attributes {dimension_semantics = [], scalar_prefetch = 0 : i64, scratch_operands = 1 : i64, tpu.core_type = #tpu.core_type<tc>} {
    %c0 = arith.constant 0 : index
    %c0_0 = arith.constant 0 : index
    %0 = vector.load %arg1[%c0, %c0_0] : memref<16x1024xf32, #tpu.memory_space<vmem>>, vector<16x1024xf32>
    %1 = arith.truncf %0 : vector<16x1024xf32> to vector<16x1024xbf16>
    %c0_1 = arith.constant 0 : index
    %c0_2 = arith.constant 0 : index
    %2 = vector.load %arg6[%c0_1, %c0_2] : memref<1024x64xbf16, #tpu.memory_space<vmem>>, vector<1024x64xbf16>
    %cst = arith.constant dense<0.000000e+00> : vector<16x64xf32>
    %3 = tpu.matmul %1, %2, %cst {dimension_numbers = #tpu.dot_dimension_numbers<[1], [0], [0], [1], [0, 0, 1, 1], [], []>} : vector<16x1024xbf16>, vector<1024x64xbf16>, vector<16x64xf32> -> vector<16x64xf32>
    %4 = vector.extract_strided_slice %3 {offsets = [0, 0], sizes = [16, 32], strides = [1, 1]} : vector<16x64xf32> to vector<16x32xf32>
    %5 = vector.extract_strided_slice %3 {offsets = [0, 32], sizes = [16, 32], strides = [1, 1]} : vector<16x64xf32> to vector<16x32xf32>
    %c0_3 = arith.constant 0 : index
    %c0_4 = arith.constant 0 : index
    %6 = vector.load %arg8[%c0_3, %c0_4] : memref<1x32xf32, #tpu.memory_space<vmem>>, vector<1x32xf32>
    %7 = vector.shape_cast %6 : vector<1x32xf32> to vector<1x32xf32>
    %8 = vector.broadcast %7 : vector<1x32xf32> to vector<16x32xf32>
    %c0_5 = arith.constant 0 : index
    %c0_6 = arith.constant 0 : index
    %9 = vector.load %arg2[%c0_5, %c0_6] : memref<16x8xf32, #tpu.memory_space<vmem>>, vector<16x8xf32>
    %10 = arith.truncf %9 : vector<16x8xf32> to vector<16x8xbf16>
    %c0_7 = arith.constant 0 : index
    %c0_8 = arith.constant 0 : index
    %11 = vector.load %arg7[%c0_7, %c0_8] : memref<8x32xbf16, #tpu.memory_space<vmem>>, vector<8x32xbf16>
    %cst_9 = arith.constant dense<0.000000e+00> : vector<16x32xf32>
    %12 = tpu.matmul %10, %11, %cst_9 {dimension_numbers = #tpu.dot_dimension_numbers<[1], [0], [0], [1], [0, 0, 1, 1], [], []>} : vector<16x8xbf16>, vector<8x32xbf16>, vector<16x32xf32> -> vector<16x32xf32>
    %13 = arith.addf %4, %12 : vector<16x32xf32>
    %14 = arith.addf %13, %8 : vector<16x32xf32>
    %cst_10 = arith.constant 0.000000e+00 : f32
    %15 = vector.broadcast %cst_10 : f32 to vector<16x32xf32>
    %16 = arith.maximumf %14, %15 : vector<16x32xf32>
    %17 = arith.truncf %16 : vector<16x32xf32> to vector<16x32xbf16>
    %c0_11 = arith.constant 0 : index
    %c0_12 = arith.constant 0 : index
    %18 = vector.load %arg9[%c0_11, %c0_12] : memref<32x32xbf16, #tpu.memory_space<vmem>>, vector<32x32xbf16>
    %cst_13 = arith.constant dense<0.000000e+00> : vector<16x32xf32>
    %19 = tpu.matmul %17, %18, %cst_13 {dimension_numbers = #tpu.dot_dimension_numbers<[1], [0], [0], [1], [0, 0, 1, 1], [], []>} : vector<16x32xbf16>, vector<32x32xbf16>, vector<16x32xf32> -> vector<16x32xf32>
    %c0_14 = arith.constant 0 : index
    %c0_15 = arith.constant 0 : index
    %20 = vector.load %arg10[%c0_14, %c0_15] : memref<1x32xf32, #tpu.memory_space<vmem>>, vector<1x32xf32>
    %21 = vector.broadcast %20 : vector<1x32xf32> to vector<16x32xf32>
    %22 = arith.addf %19, %21 : vector<16x32xf32>
    %c0_16 = arith.constant 0 : index
    %c0_17 = arith.constant 0 : index
    %23 = vector.load %arg4[%c0_16, %c0_17] : memref<16x16xf32, #tpu.memory_space<vmem>>, vector<16x16xf32>
    %24 = vector.extract_strided_slice %22 {offsets = [0, 16], sizes = [16, 16], strides = [1, 1]} : vector<16x32xf32> to vector<16x16xf32>
    %cst_18 = arith.constant 5.000000e-01 : f32
    %25 = vector.broadcast %cst_18 : f32 to vector<16x16xf32>
    %26 = arith.mulf %24, %25 : vector<16x16xf32>
    %27 = math.exp %26 : vector<16x16xf32>
    %28 = arith.mulf %23, %27 : vector<16x16xf32>
    %29 = vector.extract_strided_slice %22 {offsets = [0, 0], sizes = [16, 16], strides = [1, 1]} : vector<16x32xf32> to vector<16x16xf32>
    %30 = arith.addf %28, %29 : vector<16x16xf32>
    %c0_19 = arith.constant 0 : index
    %31 = memref.load %arg0[%c0_19] : memref<1xi32, #tpu.memory_space<smem>>
    %c1_i32 = arith.constant 1 : i32
    %32 = arith.cmpi eq, %31, %c1_i32 : i32
    %33 = arith.extui %32 : i1 to i32
    %c0_i32 = arith.constant 0 : i32
    %34 = arith.cmpi ne, %33, %c0_i32 : i32
    scf.if %34 {
      %c0_56 = arith.constant 0 : index
      %c0_57 = arith.constant 0 : index
      %88 = vector.load %arg3[%c0_56, %c0_57] : memref<16x8xf32, #tpu.memory_space<vmem>>, vector<16x8xf32>
      %89 = arith.truncf %88 : vector<16x8xf32> to vector<16x8xbf16>
      %c0_58 = arith.constant 0 : index
      %c0_59 = arith.constant 0 : index
      %90 = vector.load %arg7[%c0_58, %c0_59] : memref<8x32xbf16, #tpu.memory_space<vmem>>, vector<8x32xbf16>
      %cst_60 = arith.constant dense<0.000000e+00> : vector<16x32xf32>
      %91 = tpu.matmul %89, %90, %cst_60 {dimension_numbers = #tpu.dot_dimension_numbers<[1], [0], [0], [1], [0, 0, 1, 1], [], []>} : vector<16x8xbf16>, vector<8x32xbf16>, vector<16x32xf32> -> vector<16x32xf32>
      %92 = arith.addf %4, %91 : vector<16x32xf32>
      %93 = arith.addf %92, %8 : vector<16x32xf32>
      %cst_61 = arith.constant 0.000000e+00 : f32
      %94 = vector.broadcast %cst_61 : f32 to vector<16x32xf32>
      %95 = arith.maximumf %93, %94 : vector<16x32xf32>
      %96 = arith.truncf %95 : vector<16x32xf32> to vector<16x32xbf16>
      %c0_62 = arith.constant 0 : index
      %c0_63 = arith.constant 0 : index
      %97 = vector.load %arg9[%c0_62, %c0_63] : memref<32x32xbf16, #tpu.memory_space<vmem>>, vector<32x32xbf16>
      %cst_64 = arith.constant dense<0.000000e+00> : vector<16x32xf32>
      %98 = tpu.matmul %96, %97, %cst_64 {dimension_numbers = #tpu.dot_dimension_numbers<[1], [0], [0], [1], [0, 0, 1, 1], [], []>} : vector<16x32xbf16>, vector<32x32xbf16>, vector<16x32xf32> -> vector<16x32xf32>
      %c0_65 = arith.constant 0 : index
      %c0_66 = arith.constant 0 : index
      %99 = vector.load %arg10[%c0_65, %c0_66] : memref<1x32xf32, #tpu.memory_space<vmem>>, vector<1x32xf32>
      %100 = vector.broadcast %99 : vector<1x32xf32> to vector<16x32xf32>
      %101 = arith.addf %98, %100 : vector<16x32xf32>
      %c0_67 = arith.constant 0 : index
      %c0_68 = arith.constant 0 : index
      %102 = vector.load %arg24[%c0_67, %c0_68] : memref<16x32xf32, #tpu.memory_space<vmem>>, vector<16x32xf32>
      tpu.vector_store %arg24[%c0_67, %c0_68], %101 {strides = array<i32>} : memref<16x32xf32, #tpu.memory_space<vmem>>, vector<16x32xf32>,
    } else {
    }
    %true = arith.constant true
    %35 = arith.xori %32, %true : i1
    %36 = arith.extui %35 : i1 to i32
    %c0_i32_20 = arith.constant 0 : i32
    %37 = arith.cmpi ne, %36, %c0_i32_20 : i32
    scf.if %37 {
      %88 = arith.truncf %30 : vector<16x16xf32> to vector<16x16xbf16>
      %c0_56 = arith.constant 0 : index
      %c0_57 = arith.constant 0 : index
      %89 = vector.load %arg11[%c0_56, %c0_57] : memref<16x32xbf16, #tpu.memory_space<vmem>>, vector<16x32xbf16>
      %cst_58 = arith.constant dense<0.000000e+00> : vector<16x32xf32>
      %90 = tpu.matmul %88, %89, %cst_58 {dimension_numbers = #tpu.dot_dimension_numbers<[1], [0], [0], [1], [0, 0, 1, 1], [], []>} : vector<16x16xbf16>, vector<16x32xbf16>, vector<16x32xf32> -> vector<16x32xf32>
      %c0_59 = arith.constant 0 : index
      %c0_60 = arith.constant 0 : index
      %91 = vector.load %arg12[%c0_59, %c0_60] : memref<1x32xf32, #tpu.memory_space<vmem>>, vector<1x32xf32>
      %92 = vector.broadcast %91 : vector<1x32xf32> to vector<16x32xf32>
      %93 = arith.addf %90, %92 : vector<16x32xf32>
      %cst_61 = arith.constant 0.000000e+00 : f32
      %94 = vector.broadcast %cst_61 : f32 to vector<16x32xf32>
      %95 = arith.maximumf %93, %94 : vector<16x32xf32>
      %96 = arith.truncf %95 : vector<16x32xf32> to vector<16x32xbf16>
      %c0_62 = arith.constant 0 : index
      %c0_63 = arith.constant 0 : index
      %97 = vector.load %arg13[%c0_62, %c0_63] : memref<32x32xbf16, #tpu.memory_space<vmem>>, vector<32x32xbf16>
      %cst_64 = arith.constant dense<0.000000e+00> : vector<16x32xf32>
      %98 = tpu.matmul %96, %97, %cst_64 {dimension_numbers = #tpu.dot_dimension_numbers<[1], [0], [0], [1], [0, 0, 1, 1], [], []>} : vector<16x32xbf16>, vector<32x32xbf16>, vector<16x32xf32> -> vector<16x32xf32>
      %c0_65 = arith.constant 0 : index
      %c0_66 = arith.constant 0 : index
      %99 = vector.load %arg14[%c0_65, %c0_66] : memref<1x32xf32, #tpu.memory_space<vmem>>, vector<1x32xf32>
      %100 = vector.broadcast %99 : vector<1x32xf32> to vector<16x32xf32>
      %101 = arith.addf %98, %100 : vector<16x32xf32>
      %c0_67 = arith.constant 0 : index
      %c0_68 = arith.constant 0 : index
      %102 = vector.load %arg24[%c0_67, %c0_68] : memref<16x32xf32, #tpu.memory_space<vmem>>, vector<16x32xf32>
      tpu.vector_store %arg24[%c0_67, %c0_68], %101 {strides = array<i32>} : memref<16x32xf32, #tpu.memory_space<vmem>>, vector<16x32xf32>,
    } else {
    }
    %c0_21 = arith.constant 0 : index
    %c0_22 = arith.constant 0 : index
    %38 = vector.load %arg24[%c0_21, %c0_22] : memref<16x32xf32, #tpu.memory_space<vmem>>, vector<16x32xf32>
    %c0_23 = arith.constant 0 : index
    %c0_24 = arith.constant 0 : index
    %39 = vector.load %arg5[%c0_23, %c0_24] : memref<16x16xf32, #tpu.memory_space<vmem>>, vector<16x16xf32>
    %40 = vector.extract_strided_slice %38 {offsets = [0, 16], sizes = [16, 16], strides = [1, 1]} : vector<16x32xf32> to vector<16x16xf32>
    %cst_25 = arith.constant 5.000000e-01 : f32
    %41 = vector.broadcast %cst_25 : f32 to vector<16x16xf32>
    %42 = arith.mulf %40, %41 : vector<16x16xf32>
    %43 = math.exp %42 : vector<16x16xf32>
    %44 = arith.mulf %39, %43 : vector<16x16xf32>
    %45 = vector.extract_strided_slice %38 {offsets = [0, 0], sizes = [16, 16], strides = [1, 1]} : vector<16x32xf32> to vector<16x16xf32>
    %46 = arith.addf %44, %45 : vector<16x16xf32>
    %47 = tpu.concatenate %46, %30 in 0 : vector<16x16xf32>, vector<16x16xf32> -> vector<32x16xf32>
    %48 = arith.truncf %47 : vector<32x16xf32> to vector<32x16xbf16>
    %c0_26 = arith.constant 0 : index
    %c0_27 = arith.constant 0 : index
    %49 = vector.load %arg15[%c0_26, %c0_27] : memref<16x64xbf16, #tpu.memory_space<vmem>>, vector<16x64xbf16>
    %cst_28 = arith.constant dense<0.000000e+00> : vector<32x64xf32>
    %50 = tpu.matmul %48, %49, %cst_28 {dimension_numbers = #tpu.dot_dimension_numbers<[1], [0], [0], [1], [0, 0, 1, 1], [], []>} : vector<32x16xbf16>, vector<16x64xbf16>, vector<32x64xf32> -> vector<32x64xf32>
    %51 = vector.extract_strided_slice %50 {offsets = [0, 0], sizes = [16, 32], strides = [1, 1]} : vector<32x64xf32> to vector<16x32xf32>
    %c0_29 = arith.constant 0 : index
    %c0_30 = arith.constant 0 : index
    %52 = vector.load %arg16[%c0_29, %c0_30] : memref<1x32xf32, #tpu.memory_space<vmem>>, vector<1x32xf32>
    %53 = vector.broadcast %52 : vector<1x32xf32> to vector<16x32xf32>
    %54 = arith.addf %51, %53 : vector<16x32xf32>
    %cst_31 = arith.constant 0.000000e+00 : f32
    %55 = vector.broadcast %cst_31 : f32 to vector<16x32xf32>
    %56 = arith.maximumf %54, %55 : vector<16x32xf32>
    %57 = arith.truncf %56 : vector<16x32xf32> to vector<16x32xbf16>
    %c0_32 = arith.constant 0 : index
    %c0_33 = arith.constant 0 : index
    %58 = vector.load %arg17[%c0_32, %c0_33] : memref<32x1024xbf16, #tpu.memory_space<vmem>>, vector<32x1024xbf16>
    %cst_34 = arith.constant dense<0.000000e+00> : vector<16x1024xf32>
    %59 = tpu.matmul %57, %58, %cst_34 {dimension_numbers = #tpu.dot_dimension_numbers<[1], [0], [0], [1], [0, 0, 1, 1], [], []>} : vector<16x32xbf16>, vector<32x1024xbf16>, vector<16x1024xf32> -> vector<16x1024xf32>
    %c0_35 = arith.constant 0 : index
    %c0_36 = arith.constant 0 : index
    %60 = vector.load %arg18[%c0_35, %c0_36] : memref<1x1024xf32, #tpu.memory_space<vmem>>, vector<1x1024xf32>
    %61 = vector.broadcast %60 : vector<1x1024xf32> to vector<16x1024xf32>
    %62 = arith.addf %59, %61 : vector<16x1024xf32>
    %c0_37 = arith.constant 0 : index
    %c0_38 = arith.constant 0 : index
    %63 = vector.load %arg23[%c0_37, %c0_38] : memref<16x1024xf32, #tpu.memory_space<vmem>>, vector<16x1024xf32>
    tpu.vector_store %arg23[%c0_37, %c0_38], %62 {strides = array<i32>} : memref<16x1024xf32, #tpu.memory_space<vmem>>, vector<16x1024xf32>,
    %64 = tpu.concatenate %5, %5 in 0 : vector<16x32xf32>, vector<16x32xf32> -> vector<32x32xf32>
    %65 = vector.extract_strided_slice %50 {offsets = [0, 32], sizes = [32, 32], strides = [1, 1]} : vector<32x64xf32> to vector<32x32xf32>
    %66 = arith.addf %65, %64 : vector<32x32xf32>
    %c0_39 = arith.constant 0 : index
    %c0_40 = arith.constant 0 : index
    %67 = vector.load %arg19[%c0_39, %c0_40] : memref<1x32xf32, #tpu.memory_space<vmem>>, vector<1x32xf32>
    %68 = vector.broadcast %67 : vector<1x32xf32> to vector<32x32xf32>
    %69 = arith.addf %66, %68 : vector<32x32xf32>
    %cst_41 = arith.constant 0.000000e+00 : f32
    %70 = vector.broadcast %cst_41 : f32 to vector<32x32xf32>
    %71 = arith.maximumf %69, %70 : vector<32x32xf32>
    %72 = arith.truncf %71 : vector<32x32xf32> to vector<32x32xbf16>
    %c0_42 = arith.constant 0 : index
    %c0_43 = arith.constant 0 : index
    %73 = vector.load %arg20[%c0_42, %c0_43] : memref<32x8xbf16, #tpu.memory_space<vmem>>, vector<32x8xbf16>
    %cst_44 = arith.constant dense<0.000000e+00> : vector<32x8xf32>
    %74 = tpu.matmul %72, %73, %cst_44 {dimension_numbers = #tpu.dot_dimension_numbers<[1], [0], [0], [1], [0, 0, 1, 1], [], []>} : vector<32x32xbf16>, vector<32x8xbf16>, vector<32x8xf32> -> vector<32x8xf32>
    %c0_45 = arith.constant 0 : index
    %c0_46 = arith.constant 0 : index
    %75 = vector.load %arg21[%c0_45, %c0_46] : memref<1x8xf32, #tpu.memory_space<vmem>>, vector<1x8xf32>
    %76 = vector.broadcast %75 : vector<1x8xf32> to vector<32x8xf32>
    %77 = arith.addf %74, %76 : vector<32x8xf32>
    %c0_47 = arith.constant 0 : index
    %c0_48 = arith.constant 0 : index
    %78 = vector.load %arg22[%c0_47, %c0_48] : memref<16x128xf32, #tpu.memory_space<vmem>>, vector<16x32xf32>
    tpu.vector_store %arg22[%c0_47, %c0_48], %22 {strides = array<i32>} : memref<16x128xf32, #tpu.memory_space<vmem>>, vector<16x32xf32>,
    %c0_49 = arith.constant 0 : index
    %c32 = arith.constant 32 : index
    %79 = vector.load %arg22[%c0_49, %c32] : memref<16x128xf32, #tpu.memory_space<vmem>>, vector<16x32xf32>
    tpu.vector_store %arg22[%c0_49, %c32], %38 {strides = array<i32>} : memref<16x128xf32, #tpu.memory_space<vmem>>, vector<16x32xf32>,
    %c0_50 = arith.constant 0 : index
    %c64 = arith.constant 64 : index
    %80 = vector.load %arg22[%c0_50, %c64] : memref<16x128xf32, #tpu.memory_space<vmem>>, vector<16x16xf32>
    tpu.vector_store %arg22[%c0_50, %c64], %30 {strides = array<i32>} : memref<16x128xf32, #tpu.memory_space<vmem>>, vector<16x16xf32>,
    %c0_51 = arith.constant 0 : index
    %c80 = arith.constant 80 : index
    %81 = vector.load %arg22[%c0_51, %c80] : memref<16x128xf32, #tpu.memory_space<vmem>>, vector<16x16xf32>
    tpu.vector_store %arg22[%c0_51, %c80], %46 {strides = array<i32>} : memref<16x128xf32, #tpu.memory_space<vmem>>, vector<16x16xf32>,
    %82 = vector.extract_strided_slice %77 {offsets = [0, 0], sizes = [16, 8], strides = [1, 1]} : vector<32x8xf32> to vector<16x8xf32>
    %c0_52 = arith.constant 0 : index
    %c96 = arith.constant 96 : index
    %83 = vector.load %arg22[%c0_52, %c96] : memref<16x128xf32, #tpu.memory_space<vmem>>, vector<16x8xf32>
    tpu.vector_store %arg22[%c0_52, %c96], %82 {strides = array<i32>} : memref<16x128xf32, #tpu.memory_space<vmem>>, vector<16x8xf32>,
    %84 = vector.extract_strided_slice %77 {offsets = [16, 0], sizes = [16, 8], strides = [1, 1]} : vector<32x8xf32> to vector<16x8xf32>
    %c0_53 = arith.constant 0 : index
    %c104 = arith.constant 104 : index
    %85 = vector.load %arg22[%c0_53, %c104] : memref<16x128xf32, #tpu.memory_space<vmem>>, vector<16x8xf32>
    tpu.vector_store %arg22[%c0_53, %c104], %84 {strides = array<i32>} : memref<16x128xf32, #tpu.memory_space<vmem>>, vector<16x8xf32>,
    %cst_54 = arith.constant 0.000000e+00 : f32
    %86 = vector.broadcast %cst_54 : f32 to vector<16x16xf32>
    %c0_55 = arith.constant 0 : index
    %c112 = arith.constant 112 : index
    %87 = vector.load %arg22[%c0_55, %c112] : memref<16x128xf32, #tpu.memory_space<vmem>>, vector<16x16xf32>
    tpu.vector_store %arg22[%c0_55, %c112], %86 {strides = array<i32>} : memref<16x128xf32, #tpu.memory_space<vmem>>, vector<16x16xf32>,
    return
  }
}

</mosaic_0001>

<bundles_post_ra>
// kernel: _fused_forward.1
= control target key start
LH: loop header
LB: loop body
LE: loop exit
PB: predicated region body
PF: predicated region fallthrough
CT: control target
= control target key end

     0   :  { %vm735_vm0 = vcmask 1043456   ;;  %vm731_vm1 = vcmask 64512   ;;  %vm780_vm2 = vcmask 261120   ;;  %s2651_s0 = inlined_call_operand.<no memory space> [shape: s32[1], index: 0, kind: input, shape index: {}]   ;;  %s2652_s3 = inlined_call_operand.vmem [shape: f32[16,8], index: 3, kind: input, shape index: {}]   ;;  %s2653_s5 = inlined_call_operand.vmem [shape: f32[16,16], index: 5, kind: input, shape index: {}]   ;;  %s2654_s6 = inlined_call_operand.vmem [shape: bf16[1024,64], index: 6, kind: input, shape index: {}]   ;;  %s2655_s11 = inlined_call_operand.vmem [shape: bf16[16,32], index: 11, kind: input, shape index: {}]   ;;  %s2656_s12 = inlined_call_operand.vmem [shape: f32[1,32], index: 12, kind: input, shape index: {}]   ;;  %s2657_s13 = inlined_call_operand.vmem [shape: bf16[32,32], index: 13, kind: input, shape index: {}]   ;;  %s2658_s14 = inlined_call_operand.vmem [shape: f32[1,32], index: 14, kind: input, shape index: {}]   ;;  %s2659_s15 = inlined_call_operand.vmem [shape: bf16[16,64], index: 15, kind: input, shape index: {}]   ;;  %s2660_s16 = inlined_call_operand.vmem [shape: f32[1,32], index: 16, kind: input, shape index: {}]   ;;  %s2661_s17 = inlined_call_operand.vmem [shape: bf16[32,1024], index: 17, kind: input, shape index: {}]   ;;  %s2662_s18 = inlined_call_operand.vmem [shape: f32[1,1024], index: 18, kind: input, shape index: {}]   ;;  %s2663_s19 = inlined_call_operand.vmem [shape: f32[1,32], index: 19, kind: input, shape index: {}]   ;;  %s2664_s20 = inlined_call_operand.vmem [shape: bf16[32,8], index: 20, kind: input, shape index: {}]   ;;  %s2665_s21 = inlined_call_operand.vmem [shape: f32[1,8], index: 21, kind: input, shape index: {}]   ;;  %s2666_s22 = inlined_call_operand.vmem [shape: f32[16,128], index: 22, kind: output, shape index: {0}]   ;;  %s2667_s23 = inlined_call_operand.vmem [shape: f32[16,1024], index: 23, kind: output, shape index: {1}]   ;;  %s2668_s1 = inlined_call_operand.vmem [shape: f32[16,1024], index: 1, kind: input, shape index: {}]   ;;  %s2669_s7 = inlined_call_operand.vmem [shape: bf16[8,32], index: 7, kind: input, shape index: {}]   ;;  %s2670_s2 = inlined_call_operand.vmem [shape: f32[16,8], index: 2, kind: input, shape index: {}]   ;;  %s2671_s8 = inlined_call_operand.vmem [shape: f32[1,32], index: 8, kind: input, shape index: {}]   ;;  %s2672_s10 = inlined_call_operand.vmem [shape: f32[1,32], index: 10, kind: input, shape index: {}]   ;;  %s2673_s9 = inlined_call_operand.vmem [shape: bf16[32,32], index: 9, kind: input, shape index: {}]   ;;  %s2674_s4 = inlined_call_operand.vmem [shape: f32[16,16], index: 4, kind: input, shape index: {}]  }
   0x1   :  { %2679 = sst [smem:[#allocation4_spill]] %s2651_s0  ;;  %v77_v31 = vld [vmem:[%s2668_s1 + $0x10] sm:$0xff]  ;;  %v78_v34 = vld [vmem:[%s2668_s1 + $0x18] sm:$0xff]  ;;  %v75_v41 = vld [vmem:[%s2668_s1] sm:$0xff] }
   0x2   :  { %2680 = sst [smem:[#allocation5_spill]] %s2652_s3  ;;  %v85_v32 = vld [vmem:[%s2668_s1 + $0x50] sm:$0xff]  ;;  %v86_v35 = vld [vmem:[%s2668_s1 + $0x58] sm:$0xff]  ;;  %v83_v43 = vld [vmem:[%s2668_s1 + $0x40] sm:$0xff] }
   0x3   :  { %2681 = sst [smem:[#allocation6_spill]] %s2653_s5  ;;  %v93_v40 = vpack.c.bf16 %v85_v32, %v77_v31  ;;  %v94_v42 = vpack.c.bf16 %v86_v35, %v78_v34  ;;  %v76_v44 = vld [vmem:[%s2668_s1 + $0x8] sm:$0xff]  ;;  %v91_v49 = vpack.c.bf16 %v83_v43, %v75_v41 }
   0x4   :  { %2682 = sst [smem:[#allocation7_spill]] %s2654_s6  ;;  %v84_v45 = vld [vmem:[%s2668_s1 + $0x48] sm:$0xff] }
   0x5   :  { %2683 = sst [smem:[#allocation8_spill]] %s2655_s11  ;;  %v92_v50 = vpack.c.bf16 %v84_v45, %v76_v44  ;;  %v1866_v32 = vld [vmem:[%s2673_s9 + $0x8] sm:$0xff] }
   0x6   :  { %2684 = sst [smem:[#allocation9_spill]] %s2656_s12 }
   0x7   :  { %2685 = sst [smem:[#allocation10_spill]] %s2657_s13 }
   0x8   :  { %2686 = sst [smem:[#allocation11_spill]] %s2658_s14 }
   0x9   :  { %s2687_s24 = sld [smem:[#allocation7_spill]] }
   0xa   :  { %s2688_s27 = sld [smem:[#allocation4_spill]] }
   0xf   :  { %v1808_v0 = vld [vmem:[%s2687_s24 + $0x38] sm:$0xff]  ;;  %v1807_v4 = vld [vmem:[%s2687_s24 + $0x30] sm:$0xff]  ;;  %v1806_v8 = vld [vmem:[%s2687_s24 + $0x28] sm:$0xff] }
  0x10   :  { %v1824_v1 = vld [vmem:[%s2687_s24 + $0xb8] sm:$0xff]  ;;  %611 = vmatpush.bf16.msra.mxu0 %v1808_v0  ;;  %v1823_v5 = vld [vmem:[%s2687_s24 + $0xb0] sm:$0xff]  ;;  %v1822_v9 = vld [vmem:[%s2687_s24 + $0xa8] sm:$0xff]  ;;  %p1687_p0 = scmp.ne.s32.totalorder %s2688_s27, 1 }
  0x11   :  { %v1832_v2 = vld [vmem:[%s2687_s24 + $0xf8] sm:$0xff]  ;;  %639 = vmatpush.bf16.msra.mxu2 %v1824_v1  ;;  %v1831_v6 = vld [vmem:[%s2687_s24 + $0xf0] sm:$0xff]  ;;  %v1830_v10 = vld [vmem:[%s2687_s24 + $0xe8] sm:$0xff]  ;;  %s2689_s6 = sld [smem:[#allocation5_spill]] (!%p1687_p0) }
  0x12   :  { %v1816_v3 = vld [vmem:[%s2687_s24 + $0x78] sm:$0xff]  ;;  %653 = vmatpush.bf16.msra.mxu3 %v1832_v2  ;;  %v1815_v7 = vld [vmem:[%s2687_s24 + $0x70] sm:$0xff]  ;;  %v1814_v11 = vld [vmem:[%s2687_s24 + $0x68] sm:$0xff] }
  0x13   :  { %625 = vmatpush.bf16.msra.mxu1 %v1816_v3  ;;  %v1805_v12 = vld [vmem:[%s2687_s24 + $0x20] sm:$0xff]  ;;  %v1804_v16 = vld [vmem:[%s2687_s24 + $0x18] sm:$0xff]  ;;  %v1803_v20 = vld [vmem:[%s2687_s24 + $0x10] sm:$0xff] }
  0x14   :  { %612 = vmatpush.bf16.msra.mxu0 %v1807_v4  ;;  %v1821_v13 = vld [vmem:[%s2687_s24 + $0xa0] sm:$0xff]  ;;  %v1820_v17 = vld [vmem:[%s2687_s24 + $0x98] sm:$0xff]  ;;  %v1819_v21 = vld [vmem:[%s2687_s24 + $0x90] sm:$0xff] }
  0x15   :  { %640 = vmatpush.bf16.msra.mxu2 %v1823_v5  ;;  %v1829_v14 = vld [vmem:[%s2687_s24 + $0xe0] sm:$0xff]  ;;  %v1828_v18 = vld [vmem:[%s2687_s24 + $0xd8] sm:$0xff]  ;;  %v1827_v22 = vld [vmem:[%s2687_s24 + $0xd0] sm:$0xff] }
  0x16   :  { %654 = vmatpush.bf16.msra.mxu3 %v1831_v6  ;;  %v1813_v15 = vld [vmem:[%s2687_s24 + $0x60] sm:$0xff]  ;;  %v1812_v19 = vld [vmem:[%s2687_s24 + $0x58] sm:$0xff]  ;;  %v1811_v23 = vld [vmem:[%s2687_s24 + $0x50] sm:$0xff] }
  0x17   :  { %626 = vmatpush.bf16.msra.mxu1 %v1815_v7  ;;  %v1802_v24 = vld [vmem:[%s2687_s24 + $0x8] sm:$0xff]  ;;  %v1801_v28 = vld [vmem:[%s2687_s24] sm:$0xff]  ;;  %v1840_v33 = vld [vmem:[%s2687_s24 + $0x138] sm:$0xff] }
  0x18   :  { %613 = vmatpush.bf16.msra.mxu0 %v1806_v8  ;;  %v1818_v25 = vld [vmem:[%s2687_s24 + $0x88] sm:$0xff]  ;;  %v1817_v29 = vld [vmem:[%s2687_s24 + $0x80] sm:$0xff]  ;;  %v1856_v36 = vld [vmem:[%s2687_s24 + $0x1b8] sm:$0xff] }
  0x19   :  { %641 = vmatpush.bf16.msra.mxu2 %v1822_v9  ;;  %v1826_v26 = vld [vmem:[%s2687_s24 + $0xc8] sm:$0xff]  ;;  %v1825_v30 = vld [vmem:[%s2687_s24 + $0xc0] sm:$0xff]  ;;  %v1864_v37 = vld [vmem:[%s2687_s24 + $0x1f8] sm:$0xff] }
  0x1a   :  { %655 = vmatpush.bf16.msra.mxu3 %v1830_v10  ;;  %v1810_v27 = vld [vmem:[%s2687_s24 + $0x48] sm:$0xff]  ;;  %v1809_v38 = vld [vmem:[%s2687_s24 + $0x40] sm:$0xff]  ;;  %v1848_v39 = vld [vmem:[%s2687_s24 + $0x178] sm:$0xff] }
  0x1b   :  { %627 = vmatpush.bf16.msra.mxu1 %v1814_v11  ;;  %v1839_v46 = vld [vmem:[%s2687_s24 + $0x130] sm:$0xff]  ;;  %v1838_v52 = vld [vmem:[%s2687_s24 + $0x128] sm:$0xff]  ;;  %v1837_v56 = vld [vmem:[%s2687_s24 + $0x120] sm:$0xff] }
  0x1c   :  { %614 = vmatpush.bf16.msra.mxu0 %v1805_v12  ;;  %v1855_v47 = vld [vmem:[%s2687_s24 + $0x1b0] sm:$0xff]  ;;  %v1854_v53 = vld [vmem:[%s2687_s24 + $0x1a8] sm:$0xff]  ;;  %v1853_v57 = vld [vmem:[%s2687_s24 + $0x1a0] sm:$0xff] }
  0x1d   :  { %642 = vmatpush.bf16.msra.mxu2 %v1821_v13  ;;  %v1863_v48 = vld [vmem:[%s2687_s24 + $0x1f0] sm:$0xff]  ;;  %v1862_v54 = vld [vmem:[%s2687_s24 + $0x1e8] sm:$0xff]  ;;  %v1861_v58 = vld [vmem:[%s2687_s24 + $0x1e0] sm:$0xff] }
  0x1e   :  { %656 = vmatpush.bf16.msra.mxu3 %v1829_v14  ;;  %v1847_v51 = vld [vmem:[%s2687_s24 + $0x170] sm:$0xff]  ;;  %v1846_v55 = vld [vmem:[%s2687_s24 + $0x168] sm:$0xff]  ;;  %v1845_v59 = vld [vmem:[%s2687_s24 + $0x160] sm:$0xff] }
  0x1f   :  { %628 = vmatpush.bf16.msra.mxu1 %v1813_v15  ;;  %v1836_v60 = vld [vmem:[%s2687_s24 + $0x118] sm:$0xff]  ;;  %v1835_v0 = vld [vmem:[%s2687_s24 + $0x110] sm:$0xff]  ;;  %v1834_v4 = vld [vmem:[%s2687_s24 + $0x108] sm:$0xff] }
  0x20   :  { %615 = vmatpush.bf16.msra.mxu0 %v1804_v16  ;;  %v1852_v61 = vld [vmem:[%s2687_s24 + $0x198] sm:$0xff]  ;;  %v1851_v1 = vld [vmem:[%s2687_s24 + $0x190] sm:$0xff]  ;;  %v1850_v5 = vld [vmem:[%s2687_s24 + $0x188] sm:$0xff] }
  0x21   :  { %643 = vmatpush.bf16.msra.mxu2 %v1820_v17  ;;  %v1860_v62 = vld [vmem:[%s2687_s24 + $0x1d8] sm:$0xff]  ;;  %v1859_v2 = vld [vmem:[%s2687_s24 + $0x1d0] sm:$0xff]  ;;  %v1858_v6 = vld [vmem:[%s2687_s24 + $0x1c8] sm:$0xff] }
  0x22   :  { %657 = vmatpush.bf16.msra.mxu3 %v1828_v18  ;;  %v1844_v63 = vld [vmem:[%s2687_s24 + $0x158] sm:$0xff]  ;;  %v1843_v3 = vld [vmem:[%s2687_s24 + $0x150] sm:$0xff]  ;;  %v1842_v7 = vld [vmem:[%s2687_s24 + $0x148] sm:$0xff] }
  0x23   :  { %629 = vmatpush.bf16.msra.mxu1 %v1812_v19  ;;  %v1833_v8 = vld [vmem:[%s2687_s24 + $0x100] sm:$0xff]  ;;  %v81_v13 = vld [vmem:[%s2668_s1 + $0x30] sm:$0xff]  ;;  %v82_v16 = vld [vmem:[%s2668_s1 + $0x38] sm:$0xff] }
  0x24   :  { %616 = vmatpush.bf16.msra.mxu0 %v1803_v20  ;;  %v1849_v9 = vld [vmem:[%s2687_s24 + $0x180] sm:$0xff]  ;;  %v89_v15 = vld [vmem:[%s2668_s1 + $0x70] sm:$0xff]  ;;  %v90_v17 = vld [vmem:[%s2668_s1 + $0x78] sm:$0xff] }
  0x25   :  { %644 = vmatpush.bf16.msra.mxu2 %v1819_v21  ;;  %v1857_v10 = vld [vmem:[%s2687_s24 + $0x1c0] sm:$0xff]  ;;  %v80_v21 = vld [vmem:[%s2668_s1 + $0x28] sm:$0xff] }
  0x26   :  { %658 = vmatpush.bf16.msra.mxu3 %v1827_v22  ;;  %v79_v11 = vld [vmem:[%s2668_s1 + $0x20] sm:$0xff]  ;;  %v88_v22 = vld [vmem:[%s2668_s1 + $0x68] sm:$0xff] }
  0x27   :  { %630 = vmatpush.bf16.msra.mxu1 %v1811_v23  ;;  %v87_v12 = vld [vmem:[%s2668_s1 + $0x60] sm:$0xff]  ;;  %v97_v23 = vpack.c.bf16 %v89_v15, %v81_v13 }
  0x28   :  { %617 = vmatpush.bf16.msra.mxu0 %v1802_v24  ;;  %v730_v14 = vld [vmem:[%s2669_s7] sm:$0xf]  ;;  %v95_v19 = vpack.c.bf16 %v87_v12, %v79_v11  ;;  %v98_v24 = vpack.c.bf16 %v90_v17, %v82_v16 }
  0x29   :  { %645 = vmatpush.bf16.msra.mxu2 %v1818_v25  ;;  %v1841_v18 = vld [vmem:[%s2687_s24 + $0x140] sm:$0xff]  ;;  %v737_v20 = vsel %vm735_vm0, %v730_v14, 0  ;;  %v96_v25 = vpack.c.bf16 %v88_v22, %v80_v21  ;;  %v799_v22 = vld [vmem:[%s2674_s4 + $0x8] sm:$0xff] }
  0x2a   :  { %659 = vmatpush.bf16.msra.mxu3 %v1826_v26  ;;  %v727_v26 = vld [vmem:[%s2670_s2] sm:$0xff] }
  0x2b   :  { %631 = vmatpush.bf16.msra.mxu1 %v1810_v27  ;;  %v728_v27 = vld [vmem:[%s2670_s2 + $0x8] sm:$0xff] }
  0x2c   :  { %618 = vmatpush.bf16.msra.mxu0 %v1801_v28  ;;  %v729_v28 = vpack.c.bf16 %v728_v27, %v727_v26 }
  0x2d   :  { %646 = vmatpush.bf16.msra.mxu2 %v1817_v29 }
  0x2e   :  { %660 = vmatpush.bf16.msra.mxu3 %v1825_v30 }
  0x2f   :  { %632 = vmatpush.bf16.msra.mxu1 %v1809_v38  ;;  %619 = vmatmul.bf16.vlgmr.msra.gmra.mxu0 %v91_v49 }
  0x30   :  { %667 = vmatpush.bf16.msrb.mxu0 %v1840_v33  ;;  %647 = vmatmul.bf16.vlgmr.msra.gmra.mxu2 %v93_v40 }
  0x31   :  { %695 = vmatpush.bf16.msrb.mxu2 %v1856_v36  ;;  %661 = vmatmul.bf16.vlgmr.msra.gmra.mxu3 %v94_v42  ;;  %v1865_v36 = vld [vmem:[%s2673_s9] sm:$0xff] }
  0x32   :  { %709 = vmatpush.bf16.msrb.mxu3 %v1864_v37  ;;  %633 = vmatmul.bf16.vlgmr.msra.gmra.mxu1 %v92_v50 }
  0x33   :  { %681 = vmatpush.bf16.msrb.mxu1 %v1848_v39 }
  0x34   :  { %668 = vmatpush.bf16.msrb.mxu0 %v1839_v46 }
  0x35   :  { %696 = vmatpush.bf16.msrb.mxu2 %v1855_v47 }
  0x36   :  { %710 = vmatpush.bf16.msrb.mxu3 %v1863_v48 }
  0x37   :  { %682 = vmatpush.bf16.msrb.mxu1 %v1847_v51 }
  0x38   :  { %669 = vmatpush.bf16.msrb.mxu0 %v1838_v52 }
  0x39   :  { %697 = vmatpush.bf16.msrb.mxu2 %v1854_v53 }
  0x3a   :  { %711 = vmatpush.bf16.msrb.mxu3 %v1862_v54 }
  0x3b   :  { %683 = vmatpush.bf16.msrb.mxu1 %v1846_v55 }
  0x3c   :  { %670 = vmatpush.bf16.msrb.mxu0 %v1837_v56 }
  0x3d   :  { %698 = vmatpush.bf16.msrb.mxu2 %v1853_v57 }
  0x3e   :  { %712 = vmatpush.bf16.msrb.mxu3 %v1861_v58 }
  0x3f   :  { %684 = vmatpush.bf16.msrb.mxu1 %v1845_v59 }
  0x40   :  { %671 = vmatpush.bf16.msrb.mxu0 %v1836_v60  ;;  %v1898_v60 = vld [vmem:[%s2671_s8] ss:$0 sm:$0xff]  ;;  %s1914_s8 = smov 112  }
  0x41   :  { %699 = vmatpush.bf16.msrb.mxu2 %v1852_v61 }
  0x42   :  { %713 = vmatpush.bf16.msrb.mxu3 %v1860_v62 }
  0x43   :  { %685 = vmatpush.bf16.msrb.mxu1 %v1844_v63 }
  0x44   :  { %672 = vmatpush.bf16.msrb.mxu0 %v1835_v0 }
  0x45   :  { %700 = vmatpush.bf16.msrb.mxu2 %v1851_v1 }
  0x46   :  { %714 = vmatpush.bf16.msrb.mxu3 %v1859_v2 }
  0x47   :  { %686 = vmatpush.bf16.msrb.mxu1 %v1843_v3 }
  0x48   :  { %673 = vmatpush.bf16.msrb.mxu0 %v1834_v4 }
  0x49   :  { %701 = vmatpush.bf16.msrb.mxu2 %v1850_v5 }
  0x4a   :  { %715 = vmatpush.bf16.msrb.mxu3 %v1858_v6 }
  0x4b   :  { %687 = vmatpush.bf16.msrb.mxu1 %v1842_v7  ;;  %v1899_v7 = vld [vmem:[%s2672_s10] ss:$0 sm:$0xff] }
  0x4c   :  { %674 = vmatpush.bf16.msrb.mxu0 %v1833_v8 }
  0x4d   :  { %702 = vmatpush.bf16.msrb.mxu2 %v1849_v9 }
  0x4e   :  { %716 = vmatpush.bf16.msrb.mxu3 %v1857_v10 }
  0x4f   :  { %688 = vmatpush.bf16.msrb.mxu1 %v1841_v18  ;;  %675 = vmatmul.bf16.vlgmr.msrb.gmra.mxu0 %v95_v19  ;;  %v798_v18 = vld [vmem:[%s2674_s4] sm:$0xff] }
  0x50   :  { %746 = vmatpush.bf16.msra.mxu0 %v737_v20  ;;  %703 = vmatmul.bf16.vlgmr.msrb.gmra.mxu2 %v97_v23 }
  0x51   :  { %717 = vmatmul.bf16.vlgmr.msrb.gmra.mxu3 %v98_v24 }
  0x52   :  { %689 = vmatmul.bf16.vlgmr.msrb.gmra.mxu1 %v96_v25 }
  0x53   :  { %790 = vmatpush.bf16.msra.mxu1 %v1866_v32 }
  0x57   :  { %791 = vmatpush.bf16.msra.mxu1 %v1865_v36 }
  0x5f   :  { %1677 = vmatmul.msk.bf16.vlgmr.msra.gmra.mxu0 %vm731_vm1, %v729_v28 }
  0xac   :  { %v620_v29 = vpop.f32.mrf.mxu0 }
  0xaf   :  { %v634_v30 = vpop.f32.mrf.mxu1 }
  0xb0   :  { %v635_v37 = vadd.f32 %v634_v30, %v620_v29 }
  0xb3   :  { %v648_v31 = vpop.f32.mrf.mxu2 }
  0xb4   :  { %v622_v33 = vpop.f32.mrf.mxu0  ;;  %v662_v34 = vpop.f32.mrf.mxu3  ;;  %v649_v40 = vadd.f32 %v648_v31, %v635_v37 }
  0xb6   :  { %v663_v44 = vadd.f32 %v662_v34, %v649_v40 }
  0xb7   :  { %v636_v35 = vpop.f32.mrf.mxu1 }
  0xb8   :  { %v637_v41 = vadd.f32 %v636_v35, %v622_v33 }
  0xbb   :  { %v650_v38 = vpop.f32.mrf.mxu2 }
  0xbc   :  { %v664_v42 = vpop.f32.mrf.mxu3  ;;  %v651_v45 = vadd.f32 %v650_v38, %v637_v41 }
  0xbe   :  { %v665_v49 = vadd.f32 %v664_v42, %v651_v45 }
  0xcc   :  { %v676_v39 = vpop.f32.mrf.mxu0 }
  0xcd   :  { %v677_v48 = vadd.f32 %v676_v39, %v663_v44 }
  0xcf   :  { %v690_v43 = vpop.f32.mrf.mxu1 }
  0xd0   :  { %v691_v51 = vadd.f32 %v690_v43, %v677_v48 }
  0xd3   :  { %v704_v46 = vpop.f32.mrf.mxu2 }
  0xd4   :  { %v678_v47 = vpop.f32.mrf.mxu0  ;;  %v718_v50 = vpop.f32.mrf.mxu3  ;;  %v705_v54 = vadd.f32 %v704_v46, %v691_v51 }
  0xd5   :  { %v679_v52 = vadd.f32 %v678_v47, %v665_v49 }
  0xd6   :  { %v2298_v58 = vadd.f32 %v718_v50, %v705_v54 }
  0xd7   :  { %v692_v53 = vpop.f32.mrf.mxu1 }
  0xd8   :  { %v693_v57 = vadd.f32 %v692_v53, %v679_v52 }
  0xdb   :  { %v706_v55 = vpop.f32.mrf.mxu2 }
  0xdc   :  { %v748_v56 = vpop.f32.mrf.mxu0  ;;  %v707_v59 = vadd.f32 %v706_v55, %v693_v57  ;;  %v720_v62 = vpop.f32.mrf.mxu3 }
  0xdd   :  { %v753_v61 = vadd.f32 %v748_v56, %v2298_v58 }
  0xde   :  { %v2304_v63 = vadd.f32 %v720_v62, %v707_v59 }
  0xdf   :  { %v755_v1 = vadd.f32 %v1898_v60, %v753_v61 }
  0xe1   :  { %v757_v4 = vmax.f32 %v755_v1, 0.0 }
  0xe4   :  { %v750_v0 = vpop.f32.mrf.mxu0 }
  0xe5   :  { %v754_v2 = vadd.f32 %v750_v0, %v2304_v63 }
  0xe7   :  { %v756_v3 = vadd.f32 %v1898_v60, %v754_v2 }
  0xe9   :  { %v758_v5 = vmax.f32 %v756_v3, 0.0 }
  0xeb   :  { %v759_v6 = vpack.c.bf16 %v758_v5, %v757_v4 }
  0xed   :  { %1686 = vmatmul.msk.bf16.vlgmr.msra.gmra.mxu1 %vm780_vm2, %v759_v6 }
 0x16a   :  { %v793_v8 = vpop.f32.mrf.mxu1 }
 0x16b   :  { %v2311_v9 = vadd.f32 %v1899_v7, %v793_v8 }
 0x16d   :  { %v800_v10 = vmul.f32 0.5, %v2311_v9 }
 0x16f   :  { %v802_v11 = vmul.f32 1.442695, %v800_v10 }
 0x171   :  { %1900 = vpow2.f32 %v802_v11 }
 0x172   :  { %v795_v12 = vpop.f32.mrf.mxu1 }
 0x173   :  { %v2314_v13 = vadd.f32 %v1899_v7, %v795_v12 }
 0x175   :  { %v801_v14 = vmul.f32 0.5, %v2314_v13 }
 0x177   :  { %v1901_v15 = vpop.eup %1900  ;;  %v804_v16 = vmul.f32 1.442695, %v801_v14 }
 0x178   :  { %808 = vrot.lane.b32.xlu0 %v1901_v15, %s1914_s8 }
 0x179   :  { %1902 = vpow2.f32 %v804_v16 }
 0x17f   :  { %v1903_v17 = vpop.eup %1902 }
 0x180   :  { %810 = vrot.lane.b32.xlu0 %v1903_v17, %s1914_s8 }
 0x1ea   :  { %v809_v19 = vpop.permute.xlu0 %808 }
 0x1eb   :  { %v814_v20 = vmul.f32 %v809_v19, %v798_v18 }
 0x1ed   :  { %v2323_v21 = vadd.f32 %v814_v20, %v2311_v9 }
 0x1f1   :  { %822 = sbr.rel (%p1687_p0) target bundleno = 786 (0x312), region = 93 }
 0x1f2   :  { %v811_v23 = vpop.permute.xlu0 %810 }
 0x1f3   :  { %v815_v24 = vmul.f32 %v811_v23, %v799_v22 }
 0x1f5   :  { %v2329_v25 = vadd.f32 %v815_v24, %v2314_v13 }
 0x1f6   :  { %v826_v26 = vld [vmem:[%s2669_s7] sm:$0xf]  ;;  %v824_v28 = vld [vmem:[%s2689_s6 + $0x8] sm:$0xff] }
 0x1f7   :  { %v823_v27 = vld [vmem:[%s2689_s6] sm:$0xff]  ;;  %v831_v29 = vsel %vm735_vm0, %v826_v26, 0  ;;  %v1868_v31 = vld [vmem:[%s2673_s9 + $0x8] sm:$0xff] }
 0x1f8   :  { %v825_v30 = vpack.c.bf16 %v824_v28, %v823_v27  ;;  %840 = vmatpush.bf16.msra.mxu0 %v831_v29  ;;  %883 = vmatpush.bf16.msra.mxu1 %v1868_v31  ;;  %v1867_v32 = vld [vmem:[%s2673_s9] sm:$0xff] }
 0x1f9   :  { %v1904_v42 = vld [vmem:[%s2672_s10] ss:$0 sm:$0xff] }
 0x1fb   :  { %1688 = vmatmul.msk.bf16.vlgmr.msra.gmra.mxu0 %vm731_vm1, %v825_v30 }
 0x1fc   :  { %884 = vmatpush.bf16.msra.mxu1 %v1867_v32 }
 0x278   :  { %v842_v33 = vpop.f32.mrf.mxu0 }
 0x279   :  { %v847_v34 = vadd.f32 %v842_v33, %v2298_v58 }
 0x27b   :  { %v849_v36 = vadd.f32 %v1898_v60, %v847_v34 }
 0x27d   :  { %v851_v39 = vmax.f32 %v849_v36, 0.0 }
 0x280   :  { %v844_v35 = vpop.f32.mrf.mxu0 }
 0x281   :  { %v848_v37 = vadd.f32 %v844_v35, %v2304_v63 }
 0x283   :  { %v850_v38 = vadd.f32 %v1898_v60, %v848_v37 }
 0x285   :  { %v852_v40 = vmax.f32 %v850_v38, 0.0 }
 0x287   :  { %v853_v41 = vpack.c.bf16 %v852_v40, %v851_v39 }
 0x289   :  { %1697 = vmatmul.msk.bf16.vlgmr.msra.gmra.mxu1 %vm780_vm2, %v853_v41 }
 0x306   :  { %v886_v43 = vpop.f32.mrf.mxu1 }
 0x307   :  { %v887_v44 = vadd.f32 %v1904_v42, %v886_v43 }
 0x309   :  { %891 = vst.msk [vmem:[#allocation2] sm:$0xff] %vm780_vm2, %v887_v44 }
 0x30e   :  { %v888_v45 = vpop.f32.mrf.mxu1 }
 0x30f   :  { %v889_v46 = vadd.f32 %v1904_v42, %v888_v45 }
 0x311   :  { %892 = vst.msk [vmem:[#allocation2 + $0x8] sm:$0xff] %vm780_vm2, %v889_v46 }
 0x312 PF:  { %s2690_s26 = sld [smem:[#allocation4_spill]] }
 0x318   :  { %p1698_p1 = scmp.eq.s32.totalorder %s2690_s26, 1 }
 0x319   :  { %s2691_s24 = sld [smem:[#allocation8_spill]] (!%p1698_p1) }
 0x31a   :  { %896 = sbr.rel (%p1698_p1) target bundleno = 1080 (0x438), region = 97  ;;  %s2692_s14 = sld [smem:[#allocation10_spill]] (!%p1698_p1) }
 0x31b   :  { %s2693_s0 = sld [smem:[#allocation9_spill]] (!%p1698_p1) }
 0x31c   :  { %s2694_s11 = sld [smem:[#allocation11_spill]] (!%p1698_p1) }
 0x31f   :  { %v1869_v47 = vld [vmem:[%s2691_s24] sm:$0xff]  ;;  %v897_v48 = vpack.c.bf16 %v2329_v25, %v2323_v21  ;;  %vm910_vm3 = vcmask 130048  }
 0x320   :  { %921 = vmatpush.bf16.msra.mxu0 %v1869_v47  ;;  %v1871_v49 = vld [vmem:[%s2692_s14 + $0x8] sm:$0xff]  ;;  %v1870_v50 = vld [vmem:[%s2692_s14] sm:$0xff] }
 0x321   :  { %960 = vmatpush.bf16.msra.mxu1 %v1871_v49  ;;  %v1905_v52 = vld [vmem:[%s2693_s0] ss:$0 sm:$0xff] }
 0x322   :  { %v1906_v60 = vld [vmem:[%s2694_s11] ss:$0 sm:$0xff] }
 0x323   :  { %1703 = vmatmul.msk.bf16.vlgmr.msra.gmra.mxu0 %vm910_vm3, %v897_v48 }
 0x325   :  { %961 = vmatpush.bf16.msra.mxu1 %v1870_v50 }
 0x3a0   :  { %v923_v51 = vpop.f32.mrf.mxu0 }
 0x3a1   :  { %v924_v53 = vadd.f32 %v1905_v52, %v923_v51 }
 0x3a3   :  { %v928_v56 = vmax.f32 %v924_v53, 0.0 }
 0x3a8   :  { %v925_v54 = vpop.f32.mrf.mxu0 }
 0x3a9   :  { %v926_v55 = vadd.f32 %v1905_v52, %v925_v54 }
 0x3ab   :  { %v929_v57 = vmax.f32 %v926_v55, 0.0 }
 0x3ad   :  { %v930_v59 = vpack.c.bf16 %v929_v57, %v928_v56 }
 0x3af   :  { %1712 = vmatmul.msk.bf16.vlgmr.msra.gmra.mxu1 %vm780_vm2, %v930_v59 }
 0x42c   :  { %v963_v61 = vpop.f32.mrf.mxu1 }
 0x42d   :  { %v964_v62 = vadd.f32 %v1906_v60, %v963_v61 }
 0x42f   :  { %968 = vst.msk [vmem:[#allocation2] sm:$0xff] %vm780_vm2, %v964_v62 }
 0x434   :  { %v965_v0 = vpop.f32.mrf.mxu1 }
 0x435   :  { %v966_v1 = vadd.f32 %v1906_v60, %v965_v0 }
 0x437   :  { %969 = vst.msk [vmem:[#allocation2 + $0x8] sm:$0xff] %vm780_vm2, %v966_v1 }
 0x438 PF:  { %v2382_v2 = vld [vmem:[#allocation2] sm:$0xff]  ;;  %1354 = vst.msk [vmem:[%s2666_s22 + $0x8] sm:$0xff] %vm780_vm2, %v2314_v13  ;;  %s1915_s9 = smov 32   ;;  %s2695_s27 = sld [smem:[#allocation6_spill]]  ;;  %vm1002_vm4 = vcmask 130048   ;;  %vm1363_vm5 = vcmask 523520   ;;  %v993_v23 = vpack.c.bf16 %v2329_v25, %v2323_v21 }
 0x439   :  { %v974_v4 = vmul.f32 0.5, %v2382_v2  ;;  %1353 = vst.msk [vmem:[%s2666_s22] sm:$0xff] %vm780_vm2, %v2311_v9  ;;  %v1872_v11 = vld [vmem:[%s2659_s15] sm:$0xff]  ;;  %v1769_v30 = vld [vmem:[%s2661_s17 + $0x50] sm:$0xf]  ;;  %s1917_s28 = smov 96  }
 0x43a   :  { %1016 = vmatpush.bf16.msra.mxu0 %v1872_v11  ;;  %v1907_v9 = vld [vmem:[%s2663_s19] ss:$0 sm:$0xff]  ;;  %v1881_v27 = vld [vmem:[%s2661_s17 + $0x44] sm:$0xf]  ;;  %v1887_v31 = vld [vmem:[%s2661_s17 + $0x6c] sm:$0xf0] }
 0x43b   :  { %v976_v5 = vmul.f32 1.442695, %v974_v4  ;;  %1289 = vrot.lane.b32.xlu1 %v1907_v9, %s1915_s9  ;;  %v1753_v24 = vld [vmem:[%s2661_s17 + $0x40] sm:$0xf]  ;;  %v1755_v29 = vld [vmem:[%s2661_s17 + $0x60] sm:$0xf0]  ;;  %v1770_v33 = vor.u32 %v1887_v31, %v1769_v30 }
 0x43c   :  { %v1885_v26 = vld [vmem:[%s2661_s17 + $0x5c] sm:$0xf0]  ;;  %v1758_v32 = vor.u32 %v1881_v27, %v1755_v29  ;;  %v1777_v34 = vld [vmem:[%s2661_s17 + $0x58] sm:$0xf]  ;;  %v1873_v39 = vld [vmem:[%s2661_s17 + $0x4] sm:$0xf] }
 0x43d   :  { %1910 = vpow2.f32 %v976_v5  ;;  %v1754_v28 = vor.u32 %v1885_v26, %v1753_v24  ;;  %v1888_v35 = vld [vmem:[%s2661_s17 + $0x74] sm:$0xf0]  ;;  %1216 = vmatpush.bf16.msra.mxu2 %v1770_v33  ;;  %v1721_v37 = vld [vmem:[%s2661_s17] sm:$0xf]  ;;  %v1723_v41 = vld [vmem:[%s2661_s17 + $0x20] sm:$0xf0] }
 0x43e   :  { %v971_v3 = vld [vmem:[#allocation2 + $0x8] sm:$0xff]  ;;  %v972_v12 = vld [vmem:[%s2695_s27] sm:$0xff]  ;;  %v1778_v36 = vor.u32 %v1888_v35, %v1777_v34  ;;  %1174 = vmatpush.bf16.msra.mxu3 %v1758_v32  ;;  %v1737_v42 = vld [vmem:[%s2661_s17 + $0x10] sm:$0xf]  ;;  %v1726_v44 = vor.u32 %v1873_v39, %v1723_v41  ;;  %vm1374_vm6 = vcmask 654848   ;;  %vm1385_vm7 = vcmask 786048  }
 0x43f   :  { %v975_v6 = vmul.f32 0.5, %v971_v3  ;;  %v973_v16 = vld [vmem:[%s2695_s27 + $0x8] sm:$0xff]  ;;  %1160 = vmatpush.bf16.msra.mxu1 %v1754_v28  ;;  %v1877_v38 = vld [vmem:[%s2661_s17 + $0x1c] sm:$0xf0]  ;;  %v1879_v43 = vld [vmem:[%s2661_s17 + $0x2c] sm:$0xf0] }
 0x440   :  { %1244 = vmatpush.bf16.msrb.mxu0 %v1778_v36  ;;  %v1722_v40 = vor.u32 %v1877_v38, %v1721_v37  ;;  %v1738_v45 = vor.u32 %v1879_v43, %v1737_v42  ;;  %v1745_v46 = vld [vmem:[%s2661_s17 + $0x18] sm:$0xf]  ;;  %v1761_v49 = vld [vmem:[%s2661_s17 + $0x48] sm:$0xf]  ;;  %v1882_v51 = vld [vmem:[%s2661_s17 + $0x4c] sm:$0xf] }
 0x441   :  { %v978_v7 = vmul.f32 1.442695, %v975_v6  ;;  %v1880_v47 = vld [vmem:[%s2661_s17 + $0x34] sm:$0xf0]  ;;  %v1886_v50 = vld [vmem:[%s2661_s17 + $0x64] sm:$0xf0] }
 0x442   :  { %v1746_v48 = vor.u32 %v1880_v47, %v1745_v46  ;;  %1175 = vmatpush.bf16.msra.mxu3 %v1726_v44  ;;  %1217 = vmatpush.bf16.msra.mxu2 %v1738_v45  ;;  %v1762_v52 = vor.u32 %v1886_v50, %v1761_v49  ;;  %v1763_v53 = vld [vmem:[%s2661_s17 + $0x68] sm:$0xf0]  ;;  %v1729_v55 = vld [vmem:[%s2661_s17 + $0x8] sm:$0xf]  ;;  %v1908_v0 = vld [vmem:[%s2660_s16] ss:$0 sm:$0xff] }
 0x443   :  { %v1911_v8 = vpop.eup %1910  ;;  %1912 = vpow2.f32 %v978_v7  ;;  %1161 = vmatpush.bf16.msra.mxu1 %v1722_v40  ;;  %v1766_v54 = vor.u32 %v1882_v51, %v1763_v53  ;;  %v1878_v56 = vld [vmem:[%s2661_s17 + $0x24] sm:$0xf0]  ;;  %v1874_v57 = vld [vmem:[%s2661_s17 + $0xc] sm:$0xf]  ;;  %v1771_v11 = vld [vmem:[%s2661_s17 + $0x70] sm:$0xf0] }
 0x444   :  { %982 = vrot.lane.b32.xlu0 %v1911_v8, %s1914_s8  ;;  %1245 = vmatpush.bf16.msrb.mxu0 %v1746_v48  ;;  %v1730_v59 = vor.u32 %v1878_v56, %v1729_v55  ;;  %v1731_v60 = vld [vmem:[%s2661_s17 + $0x28] sm:$0xf0]  ;;  %v1739_v24 = vld [vmem:[%s2661_s17 + $0x30] sm:$0xf0]  ;;  %v1876_v27 = vld [vmem:[%s2661_s17 + $0x1c] sm:$0xf] }
 0x445   :  { %v1734_v61 = vor.u32 %v1874_v57, %v1731_v60  ;;  %v1747_v28 = vld [vmem:[%s2661_s17 + $0x38] sm:$0xf0]  ;;  %v1890_v31 = vld [vmem:[%s2664_s20 + $0x8] sm:$0xff]  ;;  %s1919_s14 = smov 104   ;;  %vm1396_vm8 = vcmask 851712   ;;  %vm1407_vm9 = vcmask 917312  }
 0x446   :  { %1188 = vmatpush.bf16.msrb.mxu3 %v1762_v52  ;;  %v1750_v32 = vor.u32 %v1876_v27, %v1747_v28  ;;  %1340 = vmatpush.bf16.msrb.mxu2 %v1890_v31  ;;  %vm1410_vm10 = vcmask 1048448  }
 0x447   :  { %1202 = vmatpush.bf16.msrb.mxu1 %v1766_v54 }
 0x449   :  { %v1913_v10 = vpop.eup %1912 }
 0x44a   :  { %1189 = vmatpush.bf16.msrb.mxu3 %v1730_v59 }
 0x44b   :  { %1203 = vmatpush.bf16.msrb.mxu1 %v1734_v61 }
 0x44c   :  { %984 = vrot.lane.b32.xlu0 %v1913_v10, %s1914_s8  ;;  %s1916_s8 = smov 80   ;;  %v1883_v10 = vld [vmem:[%s2661_s17 + $0x54] sm:$0xf] }
 0x454   :  { %1359 = vrot.lane.b32.xlu0 %v971_v3, %s1915_s9 }
 0x4b6   :  { %v983_v13 = vpop.permute.xlu0 %982 }
 0x4b7   :  { %v988_v14 = vmul.f32 %v983_v13, %v972_v12 }
 0x4b9   :  { %v990_v15 = vadd.f32 %v988_v14, %v2382_v2  ;;  %v1884_v14 = vld [vmem:[%s2661_s17 + $0x5c] sm:$0xf] }
 0x4bb   :  { %1379 = vrot.lane.b32.xlu0 %v990_v15, %s1916_s8 }
 0x4be   :  { %v985_v17 = vpop.permute.xlu0 %984 }
 0x4bf   :  { %v989_v18 = vmul.f32 %v985_v17, %v973_v16 }
 0x4c1   :  { %v2413_v19 = vadd.f32 %v989_v18, %v971_v3  ;;  %v1290_v3 = vpop.permute.xlu1 %1289 }
 0x4c3   :  { %v992_v20 = vpack.c.bf16 %v2413_v19, %v990_v15  ;;  %v1779_v15 = vld [vmem:[%s2661_s17 + $0x78] sm:$0xf0] }
 0x4c5   :  { %1717 = vmatmul.msk.bf16.vlgmr.msra.gmra.mxu0 %vm1002_vm4, %v992_v20  ;;  %v1774_v20 = vor.u32 %v1883_v10, %v1771_v11 }
 0x4c6   :  { %v1360_v22 = vpop.permute.xlu0 %1359 }
 0x4c7   :  { %1365 = vst.msk [vmem:[%s2666_s22 + $0x8] sm:$0xff] %vm1363_vm5, %v1360_v22  ;;  %v1782_v22 = vor.u32 %v1884_v14, %v1779_v15 }
 0x4d5   :  { %1718 = vmatmul.msk.bf16.gmra.mxu0 %vm1002_vm4, %v993_v23  ;;  %v1875_v23 = vld [vmem:[%s2661_s17 + $0x14] sm:$0xf]  ;;  %s1918_s17 = smov 64  }
 0x4d6   :  { %v1742_v30 = vor.u32 %v1875_v23, %v1739_v24 }
 0x52d   :  { %v1380_v45 = vpop.permute.xlu0 %1379 }
 0x542   :  { %v1018_v62 = vpop.f32.mrf.mxu0 }
 0x543   :  { %v1282_v1 = vadd.f32 %v1018_v62, %v2298_v58  ;;  %v1032_v4 = vadd.f32 %v1908_v0, %v1018_v62 }
 0x545   :  { %v1292_v6 = vadd.f32 %v1290_v3, %v1282_v1  ;;  %v1034_v9 = vmax.f32 %v1032_v4, 0.0 }
 0x547   :  { %v1296_v18 = vmax.f32 %v1292_v6, 0.0 }
 0x54a   :  { %v1020_v5 = vpop.f32.mrf.mxu0 }
 0x54b   :  { %v1033_v7 = vadd.f32 %v1908_v0, %v1020_v5  ;;  %v1283_v8 = vadd.f32 %v1020_v5, %v2304_v63 }
 0x54d   :  { %v1035_v12 = vmax.f32 %v1033_v7, 0.0  ;;  %v1293_v13 = vadd.f32 %v1290_v3, %v1283_v8 }
 0x54f   :  { %v1036_v16 = vpack.c.bf16 %v1035_v12, %v1034_v9  ;;  %v1297_v17 = vmax.f32 %v1293_v13, 0.0 }
 0x551   :  { %1783 = vmatmul.msk.bf16.vlgmr.msra.gmra.mxu1 %vm780_vm2, %v1036_v16  ;;  %1784 = vmatmul.msk.bf16.vlgmr.msra.gmra.mxu3 %vm780_vm2, %v1036_v16  ;;  %v1300_v26 = vpack.c.bf16 %v1297_v17, %v1296_v18 }
 0x552   :  { %1787 = vmatmul.msk.bf16.vlgmr.msra.gmra.mxu2 %vm780_vm2, %v1036_v16  ;;  %1789 = vmatmul.msk.bf16.vlgmr.msrb.gmra.mxu0 %vm780_vm2, %v1036_v16  ;;  %v1023_v29 = vpop.f32.mrf.mxu0 }
 0x553   :  { %1312 = vrot.lane.b32.xlu1 %v1300_v26, %s1917_s28  ;;  %1230 = vmatpush.bf16.msra.mxu3 %v1774_v20  ;;  %v1284_v33 = vadd.f32 %v1023_v29, %v2298_v58  ;;  %v1889_v58 = vld [vmem:[%s2664_s20] sm:$0xff] }
 0x554   :  { %1258 = vmatpush.bf16.msra.mxu1 %v1782_v22  ;;  %1341 = vmatpush.bf16.msrb.mxu2 %v1889_v58  ;;  %v1909_v26 = vld [vmem:[%s2665_s21] ss:$0 sm:$0xff] }
 0x555   :  { %v1294_v35 = vadd.f32 %v1290_v3, %v1284_v33 }
 0x557   :  { %1231 = vmatpush.bf16.msra.mxu3 %v1742_v30  ;;  %v1298_v38 = vmax.f32 %v1294_v35, 0.0 }
 0x558   :  { %1259 = vmatpush.bf16.msra.mxu1 %v1750_v32 }
 0x55a   :  { %v1025_v34 = vpop.f32.mrf.mxu0 }
 0x55b   :  { %v1285_v36 = vadd.f32 %v1025_v34, %v2304_v63  ;;  %1368 = vrot.lane.b32.xlu1 %v2323_v21, %s1918_s17 }
 0x55d   :  { %v1295_v37 = vadd.f32 %v1290_v3, %v1285_v36 }
 0x55f   :  { %v1299_v39 = vmax.f32 %v1295_v37, 0.0 }
 0x561   :  { %1785 = vmatmul.msk.bf16.vlgmr.msrb.gmra.mxu3 %vm780_vm2, %v1036_v16  ;;  %1786 = vmatmul.msk.bf16.vlgmr.msrb.gmra.mxu1 %vm780_vm2, %v1036_v16  ;;  %v1301_v40 = vpack.c.bf16 %v1299_v39, %v1298_v38  ;;  %v1920_v38 = vmov 0.0  }
 0x563   :  { %1381 = vrot.lane.b32.xlu1 %v2413_v19, %s1916_s8  ;;  %1314 = vrot.lane.b32.xlu2 %v1301_v40, %s1917_s28 }
 0x56b   :  { %1357 = vrot.lane.b32.xlu2 %v2382_v2, %s1915_s9  ;;  %v2555_v2 = vld [vmem:[%s2662_s18] sm:$0xff] }
 0x56c   :  { %v1061_v19 = vperm.slane %v2555_v2, 6  ;;  %v1056_v49 = vperm.slane %v2555_v2, 1  ;;  %v1059_v50 = vperm.slane %v2555_v2, 4  ;;  %v1058_v61 = vperm.slane %v2555_v2, 3 }
 0x56d   :  { %v1057_v6 = vperm.slane %v2555_v2, 2  ;;  %v1062_v9 = vperm.slane %v2555_v2, 7 }
 0x571   :  { %1788 = vmatmul.msk.bf16.vlgmr.msra.gmra.mxu3 %vm780_vm2, %v1036_v16  ;;  %1790 = vmatmul.msk.bf16.vlgmr.msra.gmra.mxu1 %vm780_vm2, %v1036_v16  ;;  %v1060_v16 = vperm.slane %v2555_v2, 5 }
 0x573   :  { %1370 = vrot.lane.b32.xlu2 %v2329_v25, %s1918_s17  ;;  %v1055_v25 = vperm.slane %v2555_v2, 0 }
 0x5bd   :  { %v1315_v63 = vpop.permute.xlu2 %1314 }
 0x5c5   :  { %v1313_v21 = vpop.permute.xlu1 %1312  ;;  %v1358_v41 = vpop.permute.xlu2 %1357 }
 0x5c6   :  { %1799 = vmatmul.msk.bf16.vlgmr.msrb.gmra.mxu2 %vm780_vm2, %v1313_v21  ;;  %1364 = vst.msk [vmem:[%s2666_s22] sm:$0xff] %vm1363_vm5, %v1358_v41 }
 0x5cd   :  { %v1369_v42 = vpop.permute.xlu1 %1368  ;;  %v1371_v43 = vpop.permute.xlu2 %1370 }
 0x5ce   :  { %1375 = vst.msk [vmem:[%s2666_s22] sm:$0xff] %vm1374_vm6, %v1369_v42  ;;  %v1163_v44 = vpop.f32.mrf.mxu1 }
 0x5cf   :  { %v1164_v46 = vadd.f32 %v1163_v44, %v1055_v25  ;;  %v1247_v47 = vpop.f32.mrf.mxu0  ;;  %1376 = vst.msk [vmem:[%s2666_s22 + $0x8] sm:$0xff] %vm1374_vm6, %v1371_v43 }
 0x5d0   :  { %v1248_v48 = vadd.f32 %v1247_v47, %v1061_v19  ;;  %1386 = vst.msk [vmem:[%s2666_s22] sm:$0xff] %vm1385_vm7, %v1380_v45 }
 0x5d1   :  { %1266 = vst [vmem:[%s2667_s23] sm:$0xff] %v1164_v46 }
 0x5d2   :  { %1272 = vst [vmem:[%s2667_s23 + $0x30] sm:$0xff] %v1248_v48 }
 0x5d4   :  { %v1177_v51 = vpop.f32.mrf.mxu3 }
 0x5d5   :  { %v1178_v52 = vadd.f32 %v1177_v51, %v1056_v49  ;;  %v1219_v53 = vpop.f32.mrf.mxu2  ;;  %v1382_v54 = vpop.permute.xlu1 %1381 }
 0x5d6   :  { %v1220_v55 = vadd.f32 %v1219_v53, %v1059_v50  ;;  %1387 = vst.msk [vmem:[%s2666_s22 + $0x8] sm:$0xff] %vm1385_vm7, %v1382_v54  ;;  %v1165_v56 = vpop.f32.mrf.mxu1  ;;  %1800 = vmatmul.msk.bf16.gmra.mxu2 %vm780_vm2, %v1315_v63 }
 0x5d7   :  { %1267 = vst [vmem:[%s2667_s23 + $0x8] sm:$0xff] %v1178_v52  ;;  %v1166_v57 = vadd.f32 %v1165_v56, %v1055_v25  ;;  %v1249_v59 = vpop.f32.mrf.mxu0 }
 0x5d8   :  { %1270 = vst [vmem:[%s2667_s23 + $0x20] sm:$0xff] %v1220_v55  ;;  %v1250_v60 = vadd.f32 %v1249_v59, %v1061_v19 }
 0x5d9   :  { %1274 = vst [vmem:[%s2667_s23 + $0x40] sm:$0xff] %v1166_v57 }
 0x5da   :  { %1280 = vst [vmem:[%s2667_s23 + $0x70] sm:$0xff] %v1250_v60 }
 0x5dc   :  { %v1179_v62 = vpop.f32.mrf.mxu3 }
 0x5dd   :  { %v1180_v0 = vadd.f32 %v1179_v62, %v1056_v49  ;;  %v1221_v1 = vpop.f32.mrf.mxu2 }
 0x5de   :  { %v1222_v3 = vadd.f32 %v1221_v1, %v1059_v50  ;;  %v1205_v4 = vpop.f32.mrf.mxu1 }
 0x5df   :  { %1275 = vst [vmem:[%s2667_s23 + $0x48] sm:$0xff] %v1180_v0  ;;  %v1206_v5 = vadd.f32 %v1205_v4, %v1058_v61 }
 0x5e0   :  { %1278 = vst [vmem:[%s2667_s23 + $0x60] sm:$0xff] %v1222_v3 }
 0x5e1   :  { %1269 = vst [vmem:[%s2667_s23 + $0x18] sm:$0xff] %v1206_v5 }
 0x5e4   :  { %v1191_v7 = vpop.f32.mrf.mxu3 }
 0x5e5   :  { %v1192_v8 = vadd.f32 %v1191_v7, %v1057_v6 }
 0x5e6   :  { %v1207_v10 = vpop.f32.mrf.mxu1 }
 0x5e7   :  { %1268 = vst [vmem:[%s2667_s23 + $0x10] sm:$0xff] %v1192_v8  ;;  %v1208_v11 = vadd.f32 %v1207_v10, %v1058_v61 }
 0x5e9   :  { %1277 = vst [vmem:[%s2667_s23 + $0x58] sm:$0xff] %v1208_v11 }
 0x5ec   :  { %v1193_v12 = vpop.f32.mrf.mxu3 }
 0x5ed   :  { %v1194_v13 = vadd.f32 %v1193_v12, %v1057_v6 }
 0x5ee   :  { %v1261_v14 = vpop.f32.mrf.mxu1 }
 0x5ef   :  { %1276 = vst [vmem:[%s2667_s23 + $0x50] sm:$0xff] %v1194_v13  ;;  %v1262_v15 = vadd.f32 %v1261_v14, %v1062_v9 }
 0x5f1   :  { %1273 = vst [vmem:[%s2667_s23 + $0x38] sm:$0xff] %v1262_v15 }
 0x5f4   :  { %v1233_v17 = vpop.f32.mrf.mxu3 }
 0x5f5   :  { %v1234_v18 = vadd.f32 %v1233_v17, %v1060_v16 }
 0x5f6   :  { %v1263_v20 = vpop.f32.mrf.mxu1 }
 0x5f7   :  { %1271 = vst [vmem:[%s2667_s23 + $0x28] sm:$0xff] %v1234_v18  ;;  %v1264_v22 = vadd.f32 %v1263_v20, %v1062_v9 }
 0x5f9   :  { %1281 = vst [vmem:[%s2667_s23 + $0x78] sm:$0xff] %v1264_v22 }
 0x5fc   :  { %v1235_v23 = vpop.f32.mrf.mxu3 }
 0x5fd   :  { %v1236_v24 = vadd.f32 %v1235_v23, %v1060_v16 }
 0x5ff   :  { %1279 = vst [vmem:[%s2667_s23 + $0x68] sm:$0xff] %v1236_v24 }
 0x649   :  { %v1343_v27 = vpop.f32.mrf.mxu2 }
 0x64a   :  { %v1344_v28 = vadd.f32 %v1909_v26, %v1343_v27 }
 0x64c   :  { %1390 = vrot.lane.b32.xlu2 %v1344_v28, %s1917_s28 }
 0x651   :  { %v1345_v29 = vpop.f32.mrf.mxu2 }
 0x652   :  { %v1346_v30 = vadd.f32 %v1909_v26, %v1345_v29 }
 0x654   :  { %1392 = vrot.lane.b32.xlu0 %v1346_v30, %s1917_s28 }
 0x659   :  { %v1348_v31 = vpop.f32.mrf.mxu2 }
 0x65a   :  { %v1349_v32 = vadd.f32 %v1909_v26, %v1348_v31 }
 0x65c   :  { %1401 = vrot.lane.b32.xlu1 %v1349_v32, %s1919_s14 }
 0x661   :  { %v1350_v33 = vpop.f32.mrf.mxu2 }
 0x662   :  { %v1351_v34 = vadd.f32 %v1909_v26, %v1350_v33 }
 0x664   :  { %1403 = vrot.lane.b32.xlu2 %v1351_v34, %s1919_s14 }
 0x6a6   :  { %v1391_v35 = vpop.permute.xlu2 %1390 }
 0x6a7   :  { %1397 = vst.msk [vmem:[%s2666_s22] sm:$0xff] %vm1396_vm8, %v1391_v35 }
 0x6be   :  { %v1404_v37 = vpop.permute.xlu2 %1403 }
 0x6c6   :  { %v1393_v36 = vpop.permute.xlu0 %1392 }
 0x6c7   :  { %1398 = vst.msk [vmem:[%s2666_s22 + $0x8] sm:$0xff] %vm1396_vm8, %v1393_v36 }
 0x6c8   :  { %1409 = vst.msk [vmem:[%s2666_s22 + $0x8] sm:$0xff] %vm1407_vm9, %v1404_v37 }
 0x6c9   :  { %1412 = vst.msk [vmem:[%s2666_s22 + $0x8] sm:$0xff] %vm1410_vm10, %v1920_v38 }
 0x6ce   :  { %v1402_v39 = vpop.permute.xlu1 %1401 }
 0x6cf   :  { %1408 = vst.msk [vmem:[%s2666_s22] sm:$0xff] %vm1407_vm9, %v1402_v39 }
 0x6d0   :  { %1411 = vst.msk [vmem:[%s2666_s22] sm:$0xff] %vm1410_vm10, %v1920_v38 }

</bundles_post_ra>
